<compile_context>
chip_gen: v6e
topology: v6e:2x2x1
jax: 0.10.0
libtpu: 0.0.40
codegen_flags: <defaults>
</compile_context>

<pallas_src>
import jax
import jax.numpy as jnp
from jax import lax
from jax.experimental import pallas as pl
from jax.experimental.pallas import tpu as pltpu

KERNEL1 = 5          # first Conv1d kernel size
KERNEL2 = 3          # second Conv1d kernel size
PAD = 3              # (5 - 1) // 2 + 1  (ReplicationPad1d, both sides)
NEG_SLOPE = 0.01     # LeakyReLU slope
BIAS_ROWS = 8        # sublane-aligned ones block used to fold biases into MXU


def _round_up(x, m):
    return (x + m - 1) // m * m


def _two_tensorcores():
    """True on parts with 2 TensorCores per chip (v7x); False on v5e/v6e."""
    try:
        kind = jax.devices()[0].device_kind.lower()
    except Exception:
        return False
    return ("v7" in kind) or ("7x" in kind)


def _pack_pair_weights(pa, pb, C, Ch):
    """Block-diagonally pack two branches' conv weights (+ folded biases).

    pa/pb = (w1, b1, w2, b2) with w1:(Ch,C,5), b1:(Ch,1), w2:(C,Ch,3), b2:(C,1).
    Returns:
      w1a: (2Ch, 3*2C)            conv1 taps 0..2
      w1b: (2Ch, 2*2C + 8)        conv1 taps 3..4 + bias block (column 0)
      w2a: (2C,  2*2Ch)           conv2 taps 0..1
      w2b: (2C,  2Ch + 8)         conv2 tap  2    + bias block (column 0)
    """
    w1_a, b1_a, w2_a, b2_a = pa
    w1_b, b1_b, w2_b, b2_b = pb
    C2, Ch2 = 2 * C, 2 * Ch

    z1 = jnp.zeros((Ch2, KERNEL1, C2), jnp.float32)
    z1 = z1.at[:Ch, :, :C].set(jnp.transpose(w1_a, (0, 2, 1)))
    z1 = z1.at[Ch:, :, C:].set(jnp.transpose(w1_b, (0, 2, 1)))
    bias1 = jnp.zeros((Ch2, BIAS_ROWS), jnp.float32)
    bias1 = bias1.at[:, 0].set(jnp.concatenate([b1_a, b1_b], axis=0)[:, 0])
    w1a = z1[:, :3, :].reshape(Ch2, 3 * C2)
    w1b = jnp.concatenate([z1[:, 3:, :].reshape(Ch2, 2 * C2), bias1], axis=1)

    z2 = jnp.zeros((C2, KERNEL2, Ch2), jnp.float32)
    z2 = z2.at[:C, :, :Ch].set(jnp.transpose(w2_a, (0, 2, 1)))
    z2 = z2.at[C:, :, Ch:].set(jnp.transpose(w2_b, (0, 2, 1)))
    bias2 = jnp.zeros((C2, BIAS_ROWS), jnp.float32)
    bias2 = bias2.at[:, 0].set(jnp.concatenate([b2_a, b2_b], axis=0)[:, 0])
    w2a = z2[:, :2, :].reshape(C2, 2 * Ch2)
    w2b = jnp.concatenate([z2[:, 2:, :].reshape(C2, Ch2), bias2], axis=1)
    return w1a, w1b, w2a, w2b


def interactor_forward(x, params, block_batch=None):
    """x: (B, T, C) float32 (PyTorch input convention).
    Returns (x_even_update, x_odd_update), each (B, C, T//2)."""
    B, T, C = x.shape
    assert T % 2 == 0
    L = T // 2
    Ch = params["phi"][0].shape[0]

    # ---- per-generation grid sizing -----------------------------------------
    if block_batch is None:
        if _two_tensorcores() and B >= 8:
            Bt = max(1, B // 4)       # even grid with >= 4 steps: both TCs pipeline
        else:
            Bt = min(B, 16)           # single TC: maximize lane width per step
    else:
        Bt = min(block_batch, B)
    nb = -(-B // Bt)                  # grid steps
    Bp = nb * Bt                      # batch padded to a multiple of Bt

    # per-sample padded lane width; bump so Bt*Lp is a multiple of 128 so the
    # output stores stay unmasked full-lane vst.
    Lp = _round_up(L + 2 * PAD, 8)
    for cand in range(Lp, Lp + 136, 8):
        if (Bt * cand) % 128 == 0:
            Lp = cand
            break
    # pltpu.roll is circular over the packed lane axis; Lp >= L + 2*PAD
    # guarantees every column consumed by a *valid* output column is
    # un-wrapped (wrapped columns only feed garbage columns that are
    # overwritten by replicate_edges or dropped by unpack).
    assert Lp >= L + 2 * PAD
    N = Bt * Lp                       # lane width of one packed slab

    # ---- single wrapper layout pass: split + permute + pad + batch-pack -----
    def pack(x_half):                 # (B, L, C) -> (nb, C, Bt*Lp)
        xh = jnp.transpose(x_half, (0, 2, 1))                    # (B, C, L)
        if Bp != B:
            # zero batch-pad rows flow through exp(tanh(.)): bounded, discarded
            xh = jnp.concatenate(
                [xh, jnp.zeros((Bp - B, C, L), xh.dtype)], axis=0)
        xh = jnp.pad(xh, ((0, 0), (0, 0), (PAD, Lp - L - PAD)), mode="edge")
        return xh.reshape(nb, Bt, C, Lp).transpose(0, 2, 1, 3).reshape(nb, C, N)

    xe_p = pack(x[:, ::2, :])         # even timesteps
    xo_p = pack(x[:, 1::2, :])        # odd timesteps

    # ---- block-diagonal paired weights: pair 0 = (phi,psi), pair 1 = (U,P) --
    pair_ps = _pack_pair_weights(params["phi"], params["psi"], C, Ch)
    pair_up = _pack_pair_weights(params["U"], params["P"], C, Ch)
    w1a_s, w1b_s, w2a_s, w2b_s = [jnp.stack([a, b])
                                  for a, b in zip(pair_ps, pair_up)]

    # per-segment column index (precomputed; avoids in-kernel iota + modulo)
    pos = jnp.tile(jnp.arange(Lp, dtype=jnp.int32)[None, :], (1, Bt))  # (1, N)

    # ---- kernel --------------------------------------------------------------
    def kernel(pos_ref, xe_ref, xo_ref, w1a_ref, w1b_ref, w2a_ref, w2b_ref,
               even_ref, odd_ref):
        ones = jnp.ones((BIAS_ROWS, N), jnp.float32)   # hoisted; folds biases

        def shl(z, k):                # z[:, i] <- z[:, i + k] (circular)
            return z if k == 0 else pltpu.roll(z, N - k, axis=1)

        def shr(z, k):                # z[:, i] <- z[:, i - k] (circular)
            return z if k == 0 else pltpu.roll(z, k, axis=1)

        def conv_pair(xp, idx):
            # Two branches' ReplicationPad1d -> Conv1d(k=5) -> LeakyReLU ->
            # Dropout -> Conv1d(k=3) -> Tanh, as block-diagonal matmuls on the
            # sublane-stacked (2C, N) input.  Taps are built with XLU rolls;
            # each conv layer is split into two K-chunks accumulated in f32 so
            # the full paired tap slab is never live at once.
            xs = jnp.concatenate([xp, shl(xp, 1), shl(xp, 2)], axis=0)
            h = jnp.dot(w1a_ref[idx], xs, preferred_element_type=jnp.float32)
            xs = jnp.concatenate([shl(xp, 3), shl(xp, 4), ones], axis=0)
            h = h + jnp.dot(w1b_ref[idx], xs,
                            preferred_element_type=jnp.float32)
            h = jnp.maximum(h, NEG_SLOPE * h)                    # LeakyReLU
            # TODO(synk): nn.Dropout(0.5) treated as identity (inference mode).
            hs = jnp.concatenate([h, shl(h, 1)], axis=0)
            y = jnp.dot(w2a_ref[idx], hs, preferred_element_type=jnp.float32)
            hs = jnp.concatenate([shl(h, 2), ones], axis=0)
            y = y + jnp.dot(w2b_ref[idx], hs,
                            preferred_element_type=jnp.float32)
            # conv output for time t sits at column t; re-center to column t+PAD
            return shr(jnp.tanh(y), PAD)

        def replicate_edges(z):
            # z valid at per-segment columns PAD..PAD+L-1; rebuild replication
            # padding in columns 0..PAD-1 and PAD+L..PAD+L+PAD-1.  The pos-row
            # broadcast lives only in this region (between the two conv
            # passes), so it never adds pressure while the tap slabs are live.
            p = jnp.broadcast_to(pos_ref[...], z.shape)
            out = z
            for s in range(1, PAD + 1):
                out = jnp.where(p == PAD - s, shl(z, s), out)          # left
                out = jnp.where(p == PAD + L - 1 + s, shr(z, s), out)  # right
            return out

        xeo = jnp.concatenate([xe_ref[0], xo_ref[0]], axis=0)     # (2C, N)
        g = conv_pair(xeo, 0)          # rows 0:C = phi(xe), rows C:2C = psi(xo)
        d = xeo[C:] * jnp.exp(g[:C])   # x_odd  * exp(phi(x_even))
        c = xeo[:C] * jnp.exp(g[C:])   # x_even * exp(psi(x_odd))
        # ONE shared edge-replication pass on the sublane-stacked d||c slab.
        dc = replicate_edges(jnp.concatenate([d, c], axis=0))     # (2C, N)
        up = conv_pair(dc, 1)          # rows 0:C = U(rep d), rows C:2C = P(rep c)
        # dc == d/c in all valid columns; padded columns are dropped by the
        # wrapper's unpack, so reuse dc to keep fewer values live.
        even_ref[0] = dc[C:] + up[:C]  # c + U(d)
        odd_ref[0] = dc[:C] - up[C:]   # d - P(c)

    def const_spec(a):
        return pl.BlockSpec(a.shape, lambda b, _n=a.ndim: (0,) * _n)

    slab_spec = pl.BlockSpec((1, C, N), lambda b: (b, 0, 0))
    out_struct = jax.ShapeDtypeStruct((nb, C, N), jnp.float32)

    even_p, odd_p = pl.pallas_call(
        kernel,
        out_shape=(out_struct, out_struct),
        grid_spec=pltpu.PrefetchScalarGridSpec(
            num_scalar_prefetch=0,
            grid=(nb,),
            in_specs=[const_spec(pos), slab_spec, slab_spec,
                      const_spec(w1a_s), const_spec(w1b_s),
                      const_spec(w2a_s), const_spec(w2b_s)],
            out_specs=(slab_spec, slab_spec)),
        compiler_params=pltpu.CompilerParams(
            dimension_semantics=("parallel",)),
    )(pos, xe_p, xo_p, w1a_s, w1b_s, w2a_s, w2b_s)

    def unpack(y):                    # (nb, C, Bt*Lp) -> (B, C, L)
        y = y.reshape(nb, C, Bt, Lp)[:, :, :, PAD:PAD + L]
        return y.transpose(0, 2, 1, 3).reshape(Bp, C, L)[:B]

    return unpack(even_p), unpack(odd_p)


# ---------------- pure-JAX reference (for correctness check) -----------------

def _conv_block_ref(x, w1, b1, w2, b2):
    # x: (B, C, L)
    xp = jnp.pad(x, ((0, 0), (0, 0), (PAD, PAD)), mode="edge")
    h = lax.conv_general_dilated(xp, w1, (1,), "VALID",
                                 dimension_numbers=("NCH", "OIH", "NCH"),
                                 precision=lax.Precision.HIGHEST)
    h = h + b1[None, :, :]
    h = jnp.where(h > 0, h, NEG_SLOPE * h)
    y = lax.conv_general_dilated(h, w2, (1,), "VALID",
                                 dimension_numbers=("NCH", "OIH", "NCH"),
                                 precision=lax.Precision.HIGHEST)
    y = y + b2[None, :, :]
    return jnp.tanh(y)


def interactor_ref(x, params):
    x_even = jnp.transpose(x[:, ::2, :], (0, 2, 1))
    x_odd = jnp.transpose(x[:, 1::2, :], (0, 2, 1))
    d = x_odd * jnp.exp(_conv_block_ref(x_even, *params["phi"]))
    c = x_even * jnp.exp(_conv_block_ref(x_odd, *params["psi"]))
    even_u = c + _conv_block_ref(d, *params["U"])
    odd_u = d - _conv_block_ref(c, *params["P"])
    return even_u, odd_u


# ---------------- deterministic parameter init (hidden_size=1) ---------------

def init_params(key, in_planes, hidden_size=1):
    c_hid = int(in_planes * hidden_size)
    params = {}
    names = ("phi", "psi", "U", "P")
    for name, k in zip(names, jax.random.split(key, len(names))):
        k1, k2, k3, k4 = jax.random.split(k, 4)
        s1 = 1.0 / (in_planes * KERNEL1) ** 0.5
        s2 = 1.0 / (c_hid * KERNEL2) ** 0.5
        params[name] = (
            jax.random.normal(k1, (c_hid, in_planes, KERNEL1), jnp.float32) * s1,
            jax.random.normal(k2, (c_hid, 1), jnp.float32) * 0.1,
            jax.random.normal(k3, (in_planes, c_hid, KERNEL2), jnp.float32) * s2,
            jax.random.normal(k4, (in_planes, 1), jnp.float32) * 0.1,
        )
    return params


if __name__ == "__main__":
    key = jax.random.PRNGKey(0)
    B, T, C = 32, 64, 8            # batch, sequence length, in_planes
    kx, kp = jax.random.split(key)
    x = jax.random.normal(kx, (B, T, C), jnp.float32)
    params = init_params(kp, C, hidden_size=1)

    even_u, odd_u = interactor_forward(x, params)
    jax.block_until_ready((even_u, odd_u))

    ref_even, ref_odd = interactor_ref(x, params)
    assert even_u.shape == (B, C, T // 2) and odd_u.shape == (B, C, T // 2)
    assert jnp.allclose(even_u, ref_even, atol=1e-3, rtol=1e-3), \
        float(jnp.max(jnp.abs(even_u - ref_even)))
    assert jnp.allclose(odd_u, ref_odd, atol=1e-3, rtol=1e-3), \
        float(jnp.max(jnp.abs(odd_u - ref_odd)))
    print("KERNEL_OK")
</pallas_src>

<mosaic_0001>
module attributes {stable_mosaic.version = 11 : i64} {
  func.func @kernel(%arg0: i32, %arg1: memref<1x640xi32, #tpu.memory_space<vmem>>, %arg2: memref<1x8x640xf32, #tpu.memory_space<vmem>>, %arg3: memref<1x8x640xf32, #tpu.memory_space<vmem>>, %arg4: memref<2x16x48xf32, #tpu.memory_space<vmem>>, %arg5: memref<2x16x40xf32, #tpu.memory_space<vmem>>, %arg6: memref<2x16x32xf32, #tpu.memory_space<vmem>>, %arg7: memref<2x16x24xf32, #tpu.memory_space<vmem>>, %arg8: memref<1x8x640xf32, #tpu.memory_space<vmem>>, %arg9: memref<1x8x640xf32, #tpu.memory_space<vmem>>) attributes {dimension_semantics = [#tpu.dimension_semantics<parallel>], iteration_bounds = array<i64: 2>, scalar_prefetch = 0 : i64, scratch_operands = 0 : i64, tpu.core_type = #tpu.core_type<tc>, window_params = [{pipeline_mode = #tpu.pipeline_mode<synchronous>, transform_indices = @transform_0, window_bounds = array<i64: 1, 640>}, {transform_indices = @transform_1, window_bounds = array<i64: 1, 8, 640>}, {transform_indices = @transform_2, window_bounds = array<i64: 1, 8, 640>}, {pipeline_mode = #tpu.pipeline_mode<synchronous>, transform_indices = @transform_3, window_bounds = array<i64: 2, 16, 48>}, {pipeline_mode = #tpu.pipeline_mode<synchronous>, transform_indices = @transform_4, window_bounds = array<i64: 2, 16, 40>}, {pipeline_mode = #tpu.pipeline_mode<synchronous>, transform_indices = @transform_5, window_bounds = array<i64: 2, 16, 32>}, {pipeline_mode = #tpu.pipeline_mode<synchronous>, transform_indices = @transform_6, window_bounds = array<i64: 2, 16, 24>}, {transform_indices = @transform_7, window_bounds = array<i64: 1, 8, 640>}, {transform_indices = @transform_8, window_bounds = array<i64: 1, 8, 640>}]} {
    %cst = arith.constant 1.000000e+00 : f32
    %0 = vector.broadcast %cst : f32 to vector<8x640xf32>
    %c0 = arith.constant 0 : index
    %c0_0 = arith.constant 0 : index
    %c0_1 = arith.constant 0 : index
    %1 = vector.load %arg2[%c0, %c0_0, %c0_1] : memref<1x8x640xf32, #tpu.memory_space<vmem>>, vector<1x8x640xf32>
    %2 = vector.shape_cast %1 : vector<1x8x640xf32> to vector<8x640xf32>
    %c0_2 = arith.constant 0 : index
    %c0_3 = arith.constant 0 : index
    %c0_4 = arith.constant 0 : index
    %3 = vector.load %arg3[%c0_2, %c0_3, %c0_4] : memref<1x8x640xf32, #tpu.memory_space<vmem>>, vector<1x8x640xf32>
    %4 = vector.shape_cast %3 : vector<1x8x640xf32> to vector<8x640xf32>
    %5 = tpu.concatenate %2, %4 in 0 : vector<8x640xf32>, vector<8x640xf32> -> vector<16x640xf32>
    %c639_i32 = arith.constant 639 : i32
    %6 = tpu.dynamic_rotate %5 by %c639_i32 dim 1 : vector<16x640xf32>, i32 -> vector<16x640xf32>
    %c638_i32 = arith.constant 638 : i32
    %7 = tpu.dynamic_rotate %5 by %c638_i32 dim 1 : vector<16x640xf32>, i32 -> vector<16x640xf32>
    %8 = tpu.concatenate %5, %6, %7 in 0 : vector<16x640xf32>, vector<16x640xf32>, vector<16x640xf32> -> vector<48x640xf32>
    %c0_5 = arith.constant 0 : index
    %c0_6 = arith.constant 0 : index
    %c0_7 = arith.constant 0 : index
    %9 = vector.load %arg4[%c0_5, %c0_6, %c0_7] : memref<2x16x48xf32, #tpu.memory_space<vmem>>, vector<1x16x48xf32>
    %10 = vector.shape_cast %9 : vector<1x16x48xf32> to vector<16x48xf32>
    %cst_8 = arith.constant dense<0.000000e+00> : vector<16x640xf32>
    %11 = tpu.matmul %10, %8, %cst_8 {dimension_numbers = #tpu.dot_dimension_numbers<[1], [0], [0], [1], [0, 0, 1, 1], [], []>} : vector<16x48xf32>, vector<48x640xf32>, vector<16x640xf32> -> vector<16x640xf32>
    %c637_i32 = arith.constant 637 : i32
    %12 = tpu.dynamic_rotate %5 by %c637_i32 dim 1 : vector<16x640xf32>, i32 -> vector<16x640xf32>
    %c636_i32 = arith.constant 636 : i32
    %13 = tpu.dynamic_rotate %5 by %c636_i32 dim 1 : vector<16x640xf32>, i32 -> vector<16x640xf32>
    %14 = tpu.concatenate %12, %13, %0 in 0 : vector<16x640xf32>, vector<16x640xf32>, vector<8x640xf32> -> vector<40x640xf32>
    %c0_9 = arith.constant 0 : index
    %c0_10 = arith.constant 0 : index
    %c0_11 = arith.constant 0 : index
    %15 = vector.load %arg5[%c0_9, %c0_10, %c0_11] : memref<2x16x40xf32, #tpu.memory_space<vmem>>, vector<1x16x40xf32>
    %16 = vector.shape_cast %15 : vector<1x16x40xf32> to vector<16x40xf32>
    %cst_12 = arith.constant dense<0.000000e+00> : vector<16x640xf32>
    %17 = tpu.matmul %16, %14, %cst_12 {dimension_numbers = #tpu.dot_dimension_numbers<[1], [0], [0], [1], [0, 0, 1, 1], [], []>} : vector<16x40xf32>, vector<40x640xf32>, vector<16x640xf32> -> vector<16x640xf32>
    %18 = arith.addf %11, %17 : vector<16x640xf32>
    %cst_13 = arith.constant 0.00999999977 : f32
    %19 = vector.broadcast %cst_13 : f32 to vector<16x640xf32>
    %20 = arith.mulf %19, %18 : vector<16x640xf32>
    %21 = arith.maximumf %18, %20 : vector<16x640xf32>
    %c639_i32_14 = arith.constant 639 : i32
    %22 = tpu.dynamic_rotate %21 by %c639_i32_14 dim 1 : vector<16x640xf32>, i32 -> vector<16x640xf32>
    %23 = tpu.concatenate %21, %22 in 0 : vector<16x640xf32>, vector<16x640xf32> -> vector<32x640xf32>
    %c0_15 = arith.constant 0 : index
    %c0_16 = arith.constant 0 : index
    %c0_17 = arith.constant 0 : index
    %24 = vector.load %arg6[%c0_15, %c0_16, %c0_17] : memref<2x16x32xf32, #tpu.memory_space<vmem>>, vector<1x16x32xf32>
    %25 = vector.shape_cast %24 : vector<1x16x32xf32> to vector<16x32xf32>
    %cst_18 = arith.constant dense<0.000000e+00> : vector<16x640xf32>
    %26 = tpu.matmul %25, %23, %cst_18 {dimension_numbers = #tpu.dot_dimension_numbers<[1], [0], [0], [1], [0, 0, 1, 1], [], []>} : vector<16x32xf32>, vector<32x640xf32>, vector<16x640xf32> -> vector<16x640xf32>
    %c638_i32_19 = arith.constant 638 : i32
    %27 = tpu.dynamic_rotate %21 by %c638_i32_19 dim 1 : vector<16x640xf32>, i32 -> vector<16x640xf32>
    %28 = tpu.concatenate %27, %0 in 0 : vector<16x640xf32>, vector<8x640xf32> -> vector<24x640xf32>
    %c0_20 = arith.constant 0 : index
    %c0_21 = arith.constant 0 : index
    %c0_22 = arith.constant 0 : index
    %29 = vector.load %arg7[%c0_20, %c0_21, %c0_22] : memref<2x16x24xf32, #tpu.memory_space<vmem>>, vector<1x16x24xf32>
    %30 = vector.shape_cast %29 : vector<1x16x24xf32> to vector<16x24xf32>
    %cst_23 = arith.constant dense<0.000000e+00> : vector<16x640xf32>
    %31 = tpu.matmul %30, %28, %cst_23 {dimension_numbers = #tpu.dot_dimension_numbers<[1], [0], [0], [1], [0, 0, 1, 1], [], []>} : vector<16x24xf32>, vector<24x640xf32>, vector<16x640xf32> -> vector<16x640xf32>
    %32 = arith.addf %26, %31 : vector<16x640xf32>
    %33 = math.tanh %32 : vector<16x640xf32>
    %c3_i32 = arith.constant 3 : i32
    %34 = tpu.dynamic_rotate %33 by %c3_i32 dim 1 : vector<16x640xf32>, i32 -> vector<16x640xf32>
    %35 = vector.extract_strided_slice %5 {offsets = [8, 0], sizes = [8, 640], strides = [1, 1]} : vector<16x640xf32> to vector<8x640xf32>
    %36 = vector.extract_strided_slice %34 {offsets = [0, 0], sizes = [8, 640], strides = [1, 1]} : vector<16x640xf32> to vector<8x640xf32>
    %37 = math.exp %36 : vector<8x640xf32>
    %38 = arith.mulf %35, %37 : vector<8x640xf32>
    %39 = vector.extract_strided_slice %5 {offsets = [0, 0], sizes = [8, 640], strides = [1, 1]} : vector<16x640xf32> to vector<8x640xf32>
    %40 = vector.extract_strided_slice %34 {offsets = [8, 0], sizes = [8, 640], strides = [1, 1]} : vector<16x640xf32> to vector<8x640xf32>
    %41 = math.exp %40 : vector<8x640xf32>
    %42 = arith.mulf %39, %41 : vector<8x640xf32>
    %43 = tpu.concatenate %38, %42 in 0 : vector<8x640xf32>, vector<8x640xf32> -> vector<16x640xf32>
    %c0_24 = arith.constant 0 : index
    %c0_25 = arith.constant 0 : index
    %44 = vector.load %arg1[%c0_24, %c0_25] : memref<1x640xi32, #tpu.memory_space<vmem>>, vector<1x640xi32>
    %45 = vector.shape_cast %44 : vector<1x640xi32> to vector<1x640xi32>
    %46 = vector.broadcast %45 : vector<1x640xi32> to vector<16x640xi32>
    %c2_i32 = arith.constant 2 : i32
    %47 = vector.broadcast %c2_i32 : i32 to vector<16x640xi32>
    %48 = arith.cmpi eq, %46, %47 : vector<16x640xi32>
    %c639_i32_26 = arith.constant 639 : i32
    %49 = tpu.dynamic_rotate %43 by %c639_i32_26 dim 1 : vector<16x640xf32>, i32 -> vector<16x640xf32>
    %50 = arith.select %48, %49, %43 : vector<16x640xi1>, vector<16x640xf32>
    %c35_i32 = arith.constant 35 : i32
    %51 = vector.broadcast %c35_i32 : i32 to vector<16x640xi32>
    %52 = arith.cmpi eq, %46, %51 : vector<16x640xi32>
    %c1_i32 = arith.constant 1 : i32
    %53 = tpu.dynamic_rotate %43 by %c1_i32 dim 1 : vector<16x640xf32>, i32 -> vector<16x640xf32>
    %54 = arith.select %52, %53, %50 : vector<16x640xi1>, vector<16x640xf32>
    %c1_i32_27 = arith.constant 1 : i32
    %55 = vector.broadcast %c1_i32_27 : i32 to vector<16x640xi32>
    %56 = arith.cmpi eq, %46, %55 : vector<16x640xi32>
    %c638_i32_28 = arith.constant 638 : i32
    %57 = tpu.dynamic_rotate %43 by %c638_i32_28 dim 1 : vector<16x640xf32>, i32 -> vector<16x640xf32>
    %58 = arith.select %56, %57, %54 : vector<16x640xi1>, vector<16x640xf32>
    %c36_i32 = arith.constant 36 : i32
    %59 = vector.broadcast %c36_i32 : i32 to vector<16x640xi32>
    %60 = arith.cmpi eq, %46, %59 : vector<16x640xi32>
    %c2_i32_29 = arith.constant 2 : i32
    %61 = tpu.dynamic_rotate %43 by %c2_i32_29 dim 1 : vector<16x640xf32>, i32 -> vector<16x640xf32>
    %62 = arith.select %60, %61, %58 : vector<16x640xi1>, vector<16x640xf32>
    %c0_i32 = arith.constant 0 : i32
    %63 = vector.broadcast %c0_i32 : i32 to vector<16x640xi32>
    %64 = arith.cmpi eq, %46, %63 : vector<16x640xi32>
    %c637_i32_30 = arith.constant 637 : i32
    %65 = tpu.dynamic_rotate %43 by %c637_i32_30 dim 1 : vector<16x640xf32>, i32 -> vector<16x640xf32>
    %66 = arith.select %64, %65, %62 : vector<16x640xi1>, vector<16x640xf32>
    %c37_i32 = arith.constant 37 : i32
    %67 = vector.broadcast %c37_i32 : i32 to vector<16x640xi32>
    %68 = arith.cmpi eq, %46, %67 : vector<16x640xi32>
    %c3_i32_31 = arith.constant 3 : i32
    %69 = tpu.dynamic_rotate %43 by %c3_i32_31 dim 1 : vector<16x640xf32>, i32 -> vector<16x640xf32>
    %70 = arith.select %68, %69, %66 : vector<16x640xi1>, vector<16x640xf32>
    %c639_i32_32 = arith.constant 639 : i32
    %71 = tpu.dynamic_rotate %70 by %c639_i32_32 dim 1 : vector<16x640xf32>, i32 -> vector<16x640xf32>
    %c638_i32_33 = arith.constant 638 : i32
    %72 = tpu.dynamic_rotate %70 by %c638_i32_33 dim 1 : vector<16x640xf32>, i32 -> vector<16x640xf32>
    %73 = tpu.concatenate %70, %71, %72 in 0 : vector<16x640xf32>, vector<16x640xf32>, vector<16x640xf32> -> vector<48x640xf32>
    %c1 = arith.constant 1 : index
    %c0_34 = arith.constant 0 : index
    %c0_35 = arith.constant 0 : index
    %74 = vector.load %arg4[%c1, %c0_34, %c0_35] : memref<2x16x48xf32, #tpu.memory_space<vmem>>, vector<1x16x48xf32>
    %75 = vector.shape_cast %74 : vector<1x16x48xf32> to vector<16x48xf32>
    %cst_36 = arith.constant dense<0.000000e+00> : vector<16x640xf32>
    %76 = tpu.matmul %75, %73, %cst_36 {dimension_numbers = #tpu.dot_dimension_numbers<[1], [0], [0], [1], [0, 0, 1, 1], [], []>} : vector<16x48xf32>, vector<48x640xf32>, vector<16x640xf32> -> vector<16x640xf32>
    %c637_i32_37 = arith.constant 637 : i32
    %77 = tpu.dynamic_rotate %70 by %c637_i32_37 dim 1 : vector<16x640xf32>, i32 -> vector<16x640xf32>
    %c636_i32_38 = arith.constant 636 : i32
    %78 = tpu.dynamic_rotate %70 by %c636_i32_38 dim 1 : vector<16x640xf32>, i32 -> vector<16x640xf32>
    %79 = tpu.concatenate %77, %78, %0 in 0 : vector<16x640xf32>, vector<16x640xf32>, vector<8x640xf32> -> vector<40x640xf32>
    %c1_39 = arith.constant 1 : index
    %c0_40 = arith.constant 0 : index
    %c0_41 = arith.constant 0 : index
    %80 = vector.load %arg5[%c1_39, %c0_40, %c0_41] : memref<2x16x40xf32, #tpu.memory_space<vmem>>, vector<1x16x40xf32>
    %81 = vector.shape_cast %80 : vector<1x16x40xf32> to vector<16x40xf32>
    %cst_42 = arith.constant dense<0.000000e+00> : vector<16x640xf32>
    %82 = tpu.matmul %81, %79, %cst_42 {dimension_numbers = #tpu.dot_dimension_numbers<[1], [0], [0], [1], [0, 0, 1, 1], [], []>} : vector<16x40xf32>, vector<40x640xf32>, vector<16x640xf32> -> vector<16x640xf32>
    %83 = arith.addf %76, %82 : vector<16x640xf32>
    %cst_43 = arith.constant 0.00999999977 : f32
    %84 = vector.broadcast %cst_43 : f32 to vector<16x640xf32>
    %85 = arith.mulf %84, %83 : vector<16x640xf32>
    %86 = arith.maximumf %83, %85 : vector<16x640xf32>
    %c639_i32_44 = arith.constant 639 : i32
    %87 = tpu.dynamic_rotate %86 by %c639_i32_44 dim 1 : vector<16x640xf32>, i32 -> vector<16x640xf32>
    %88 = tpu.concatenate %86, %87 in 0 : vector<16x640xf32>, vector<16x640xf32> -> vector<32x640xf32>
    %c1_45 = arith.constant 1 : index
    %c0_46 = arith.constant 0 : index
    %c0_47 = arith.constant 0 : index
    %89 = vector.load %arg6[%c1_45, %c0_46, %c0_47] : memref<2x16x32xf32, #tpu.memory_space<vmem>>, vector<1x16x32xf32>
    %90 = vector.shape_cast %89 : vector<1x16x32xf32> to vector<16x32xf32>
    %cst_48 = arith.constant dense<0.000000e+00> : vector<16x640xf32>
    %91 = tpu.matmul %90, %88, %cst_48 {dimension_numbers = #tpu.dot_dimension_numbers<[1], [0], [0], [1], [0, 0, 1, 1], [], []>} : vector<16x32xf32>, vector<32x640xf32>, vector<16x640xf32> -> vector<16x640xf32>
    %c638_i32_49 = arith.constant 638 : i32
    %92 = tpu.dynamic_rotate %86 by %c638_i32_49 dim 1 : vector<16x640xf32>, i32 -> vector<16x640xf32>
    %93 = tpu.concatenate %92, %0 in 0 : vector<16x640xf32>, vector<8x640xf32> -> vector<24x640xf32>
    %c1_50 = arith.constant 1 : index
    %c0_51 = arith.constant 0 : index
    %c0_52 = arith.constant 0 : index
    %94 = vector.load %arg7[%c1_50, %c0_51, %c0_52] : memref<2x16x24xf32, #tpu.memory_space<vmem>>, vector<1x16x24xf32>
    %95 = vector.shape_cast %94 : vector<1x16x24xf32> to vector<16x24xf32>
    %cst_53 = arith.constant dense<0.000000e+00> : vector<16x640xf32>
    %96 = tpu.matmul %95, %93, %cst_53 {dimension_numbers = #tpu.dot_dimension_numbers<[1], [0], [0], [1], [0, 0, 1, 1], [], []>} : vector<16x24xf32>, vector<24x640xf32>, vector<16x640xf32> -> vector<16x640xf32>
    %97 = arith.addf %91, %96 : vector<16x640xf32>
    %98 = math.tanh %97 : vector<16x640xf32>
    %c3_i32_54 = arith.constant 3 : i32
    %99 = tpu.dynamic_rotate %98 by %c3_i32_54 dim 1 : vector<16x640xf32>, i32 -> vector<16x640xf32>
    %100 = vector.extract_strided_slice %70 {offsets = [8, 0], sizes = [8, 640], strides = [1, 1]} : vector<16x640xf32> to vector<8x640xf32>
    %101 = vector.extract_strided_slice %99 {offsets = [0, 0], sizes = [8, 640], strides = [1, 1]} : vector<16x640xf32> to vector<8x640xf32>
    %102 = arith.addf %100, %101 : vector<8x640xf32>
    %c0_55 = arith.constant 0 : index
    %c0_56 = arith.constant 0 : index
    %c0_57 = arith.constant 0 : index
    %103 = vector.load %arg8[%c0_55, %c0_56, %c0_57] : memref<1x8x640xf32, #tpu.memory_space<vmem>>, vector<1x8x640xf32>
    %104 = vector.shape_cast %103 : vector<1x8x640xf32> to vector<8x640xf32>
    %105 = vector.shape_cast %102 : vector<8x640xf32> to vector<1x8x640xf32>
    tpu.vector_store %arg8[%c0_55, %c0_56, %c0_57], %105 {strides = array<i32>} : memref<1x8x640xf32, #tpu.memory_space<vmem>>, vector<1x8x640xf32>,
    %106 = vector.extract_strided_slice %70 {offsets = [0, 0], sizes = [8, 640], strides = [1, 1]} : vector<16x640xf32> to vector<8x640xf32>
    %107 = vector.extract_strided_slice %99 {offsets = [8, 0], sizes = [8, 640], strides = [1, 1]} : vector<16x640xf32> to vector<8x640xf32>
    %108 = arith.subf %106, %107 : vector<8x640xf32>
    %c0_58 = arith.constant 0 : index
    %c0_59 = arith.constant 0 : index
    %c0_60 = arith.constant 0 : index
    %109 = vector.load %arg9[%c0_58, %c0_59, %c0_60] : memref<1x8x640xf32, #tpu.memory_space<vmem>>, vector<1x8x640xf32>
    %110 = vector.shape_cast %109 : vector<1x8x640xf32> to vector<8x640xf32>
    %111 = vector.shape_cast %108 : vector<8x640xf32> to vector<1x8x640xf32>
    tpu.vector_store %arg9[%c0_58, %c0_59, %c0_60], %111 {strides = array<i32>} : memref<1x8x640xf32, #tpu.memory_space<vmem>>, vector<1x8x640xf32>,
    return
  }
  func.func @transform_0(%arg0: i32) -> (i32, i32) {
    %c0_i32 = arith.constant 0 : i32
    %c0_i32_0 = arith.constant 0 : i32
    %c0_i32_1 = arith.constant 0 : i32
    return %c0_i32, %c0_i32_0 : i32, i32
  }
  func.func @transform_1(%arg0: i32) -> (i32, i32, i32) {
    %c0_i32 = arith.constant 0 : i32
    %c0_i32_0 = arith.constant 0 : i32
    %c0_i32_1 = arith.constant 0 : i32
    return %arg0, %c0_i32, %c0_i32_0 : i32, i32, i32
  }
  func.func @transform_2(%arg0: i32) -> (i32, i32, i32) {
    %c0_i32 = arith.constant 0 : i32
    %c0_i32_0 = arith.constant 0 : i32
    %c0_i32_1 = arith.constant 0 : i32
    return %arg0, %c0_i32, %c0_i32_0 : i32, i32, i32
  }
  func.func @transform_3(%arg0: i32) -> (i32, i32, i32) {
    %c0_i32 = arith.constant 0 : i32
    %c0_i32_0 = arith.constant 0 : i32
    %c0_i32_1 = arith.constant 0 : i32
    %c0_i32_2 = arith.constant 0 : i32
    return %c0_i32, %c0_i32_0, %c0_i32_1 : i32, i32, i32
  }
  func.func @transform_4(%arg0: i32) -> (i32, i32, i32) {
    %c0_i32 = arith.constant 0 : i32
    %c0_i32_0 = arith.constant 0 : i32
    %c0_i32_1 = arith.constant 0 : i32
    %c0_i32_2 = arith.constant 0 : i32
    return %c0_i32, %c0_i32_0, %c0_i32_1 : i32, i32, i32
  }
  func.func @transform_5(%arg0: i32) -> (i32, i32, i32) {
    %c0_i32 = arith.constant 0 : i32
    %c0_i32_0 = arith.constant 0 : i32
    %c0_i32_1 = arith.constant 0 : i32
    %c0_i32_2 = arith.constant 0 : i32
    return %c0_i32, %c0_i32_0, %c0_i32_1 : i32, i32, i32
  }
  func.func @transform_6(%arg0: i32) -> (i32, i32, i32) {
    %c0_i32 = arith.constant 0 : i32
    %c0_i32_0 = arith.constant 0 : i32
    %c0_i32_1 = arith.constant 0 : i32
    %c0_i32_2 = arith.constant 0 : i32
    return %c0_i32, %c0_i32_0, %c0_i32_1 : i32, i32, i32
  }
  func.func @transform_7(%arg0: i32) -> (i32, i32, i32) {
    %c0_i32 = arith.constant 0 : i32
    %c0_i32_0 = arith.constant 0 : i32
    %c0_i32_1 = arith.constant 0 : i32
    return %arg0, %c0_i32, %c0_i32_0 : i32, i32, i32
  }
  func.func @transform_8(%arg0: i32) -> (i32, i32, i32) {
    %c0_i32 = arith.constant 0 : i32
    %c0_i32_0 = arith.constant 0 : i32
    %c0_i32_1 = arith.constant 0 : i32
    return %arg0, %c0_i32, %c0_i32_0 : i32, i32, i32
  }
}

</mosaic_0001>

<bundles_post_ra>
// kernel: tpu_custom_call.1
= control target key start
LH: loop header
LB: loop body
LE: loop exit
PB: predicated region body
PF: predicated region fallthrough
CT: control target
= control target key end

     0   :  { %s5974_s0 = inlined_call_operand.hbm [shape: s32[1,640], index: 0, kind: input, shape index: {}]   ;;  %s5975_s1 = inlined_call_operand.hbm [shape: f32[2,8,640], index: 1, kind: input, shape index: {}]   ;;  %s5976_s2 = inlined_call_operand.hbm [shape: f32[2,8,640], index: 2, kind: input, shape index: {}]   ;;  %s5977_s3 = inlined_call_operand.hbm [shape: f32[2,16,48], index: 3, kind: input, shape index: {}]   ;;  %s5978_s4 = inlined_call_operand.hbm [shape: f32[2,16,40], index: 4, kind: input, shape index: {}]   ;;  %s5979_s5 = inlined_call_operand.hbm [shape: f32[2,16,32], index: 5, kind: input, shape index: {}]   ;;  %s5980_s6 = inlined_call_operand.hbm [shape: f32[2,16,24], index: 6, kind: input, shape index: {}]   ;;  %s5981_s7 = inlined_call_operand.hbm [shape: f32[2,8,640], index: 7, kind: output, shape index: {0}]   ;;  %s5982_s8 = inlined_call_operand.hbm [shape: f32[2,8,640], index: 8, kind: output, shape index: {1}]  }
   0x1   :  { %6006 = sst [smem:[#allocation26_spill]] %s5974_s0 }
   0x2   :  { %6007 = sst [smem:[#allocation27_spill]] %s5977_s3 }
   0x3   :  { %6008 = sst [smem:[#allocation28_spill]] %s5979_s5 }
   0x4   :  { %14 = vsyncpa [#allocation3], 0 }
   0x5   :  { %15 = vsyncpa [#allocation6], 0 }
   0x6   :  { %17 = vsyncpa [#allocation6 + $0x1], 0 }
   0x7   :  { %18 = vsyncpa [#allocation9], 0 }
   0x8   :  { %19 = vsyncpa [#allocation12], 0 }
   0x9   :  { %20 = vsyncpa [#allocation4], 0 }
   0xa   :  { %22 = vsyncpa [#allocation4 + $0x1], 0 }
   0xb   :  { %23 = vsyncpa [#allocation16], 0 }
   0xc   :  { %25 = vsyncpa [#allocation16 + $0x1], 0  ;;  %s4155_s27 = smov 0   ;;  %s4157_s28 = smov 0  }
   0xd   :  { %s4159_s29 = smov 0   ;;  %s4161_s30 = smov 0  }
   0xe LB: > { %6009 = sst [smem:[#allocation23_spill]] %s4084_s29  ;;  %s4090_s9 = smov [#allocation8]   ;;  %s4088_s30 = sphi %s4161_s30, %s6075_s30   ;;  %s4084_s29 = sphi %s4159_s29, %s6077_s29   ;;  %s4080_s28 = sphi %s4157_s28, %s6079_s28   ;;  %s4076_s27 = sphi %s4155_s27, %s6078_s27  }
   0xf   : > { %s268_s10 = sshll.u32 %s4090_s9, 4  ;;  %s4176_s11 = sadd.s32 4294967295, %s4088_s30   ;;  %s269_s10 = int_to_ptr.vmem [resolvable:$true] %s268_s10 }
  0x10   : > { %p3390_p0 = scmp.ge.s32.totalorder %s4088_s30, 1  ;;  %p5992_p1 = scmp.eq.s32.totalorder %s4176_s11, 0 }
  0x11   : > { %p245_p2 = scmp.lt.s32.totalorder %s4088_s30, 3  ;;  %s4091_s13 = smov [#allocation11]  }
  0x12   : > { %s294_s14 = sshll.u32 %s4091_s13, 4  ;;  %s3807_s17 = scalar_lea.vmem %s269_s10, 512  ;;  %s295_s14 = int_to_ptr.vmem [resolvable:$true] %s294_s14 }
  0x13   : > { %p4181_p3 = pnand %p3390_p0, %p245_p2  ;;  %p3808_p8 = scmp.ne.s32.totalorder %s269_s10, %s3807_s17 }
  0x14   : > { %p3815_p11 = scmp.lt.s32.totalorder %s269_s10, %s269_s10  ;;  %p3816_p12 = scmp.lt.s32.totalorder %s3807_s17, %s3807_s17 }
  0x15   : > { %s6010_s12 = scalar_select %p4181_p3, 1, 0 }
  0x16   : > { %p3640_p5 = pneg %p4181_p3  ;;  %p3817_p13 = por %p3816_p12, %p3815_p11 }
  0x18   : > { %p4190_p6 = pnand %p3640_p5, %p5992_p1 }
  0x1a   : > { %s6011_s15 = scalar_select %p4190_p6, 1, 0 }
  0x1b   : > { %p4196_p7 = pneg %p4190_p6 }
  0x1d   : > { %p3810_p9 = pnand %p3808_p8, %p4196_p7 }
  0x1f   : > { %p3811_p10 = pneg %p3810_p9 }
  0x21   : > { %p3818_p0 = pnand %p3817_p13, %p3811_p10 }
  0x23   : > { %3821 = shalt.err (!%p3818_p0)
}
  0x24   : > { %s5984_s18 = smov 128   ;;  %s5986_s19 = smov 8  }
  0x25   : > { %s6013_s3 = sld [smem:[#allocation27_spill]]  ;;  %s3833_s22 = scalar_lea.vmem %s295_s14, 512 }
  0x26   : > { %p3834_p2 = scmp.ne.s32.totalorder %s295_s14, %s3833_s22  ;;  %p3841_p9 = scmp.lt.s32.totalorder %s295_s14, %s295_s14 }
  0x27   : > { %p3842_p10 = scmp.lt.s32.totalorder %s3833_s22, %s3833_s22 }
  0x28   : > { %p3836_p5 = pnand %p3834_p2, %p4196_p7 }
  0x29   : > { %p3843_p11 = por %p3842_p10, %p3841_p9 }
  0x2a   : > { %p3837_p8 = pneg %p3836_p5 }
  0x2b   : > { %3646 = dma.hbm_to_vmem [thread:$0]  (!%p4190_p6), %s6013_s3, 512, %s269_s10, [#allocation9], %s5984_s18, %s5984_s18, %s5986_s19  }
  0x2c   : > { %p3844_p12 = pnand %p3843_p11, %p3837_p8 }
  0x2e   : > { %3847 = shalt.err (!%p3844_p12)
}
  0x2f   : > { %s6014_s5 = sld [smem:[#allocation28_spill]]  ;;  %s3389_s25 = sadd.s32 4294967294, %s4088_s30  }
  0x30   : > { %s4222_s26 = sadd.s32 1, %s4088_s30   ;;  %s59_s10 = sadd.s32 1, %s4084_s29 }
  0x31   : > { %6015 = sst [smem:[#allocation24_spill]] %s4222_s26  ;;  %s56_s9 = ssub.s32 %s4088_s30, %s4222_s26 }
  0x32   : > { %p57_p13 = scmp.eq.s32.totalorder %s56_s9, 0  ;;  %p66_p0 = scmp.ne.s32.totalorder %s4084_s29, %s4080_s28 }
  0x33   : > { %p67_p2 = scmp.eq.s32.totalorder %s4088_s30, 0  ;;  %p72_p5 = scmp.ne.s32.totalorder %s4080_s28, %s4076_s27 }
  0x34   : > { %s4233_s13 = scalar_select %p57_p13, %s4084_s29, %s59_s10  }
  0x35   : > { %3652 = dma.hbm_to_vmem [thread:$0]  (!%p4190_p6), %s6014_s5, 512, %s295_s14, [#allocation12], %s5984_s18, %s5984_s18, %s5986_s19  }
  0x36   : > { %6016 = sst [smem:[#allocation25_spill]] %s4233_s13  ;;  %p68_p8 = por %p67_p2, %p66_p0 }
  0x37   : > { %p4237_p9 = por %p5992_p1, %p72_p5  ;;  %p206_p10 = scmp.eq.s32.totalorder %s4176_s11, 1 }
  0x38   : > { %p212_p11 = scmp.eq.s32.totalorder %s3389_s25, 1  ;;  %p3675_p12 = scmp.lt.s32.totalorder %s4088_s30, 2 }
  0x39   : > { %s6017_s17 = scalar_select %p4237_p9, 1, 0 }
  0x3a   : > { %s321_s14 = sand.u32 1, %s4088_s30   ;;  %p4244_p4 = por %p206_p10, %p66_p0 }
  0x3b   : > { %p4248_p3 = por %p212_p11, %p72_p5  ;;  %s323_s22 = sand.u32 1, %s4084_s29  }
  0x3c   : > { %s6018_s20 = scalar_select %p4244_p4, 1, 0 }
  0x3d   : > { %s6019_s21 = scalar_select %p4248_p3, 1, 0 }
  0x3e   : > { %s4253_s23 = smul.u32 40, %s323_s22  ;;  %p4255_p13 = pnand %p3675_p12, %p68_p8 }
  0x3f   : > { %s5989_s25 = smul.u32 640, %s4088_s30  ;;  %s4094_s3 = smov [#allocation2]  }
  0x40   : > { %s325_s19 = scalar_lea.vmem [#allocation5], %s4253_s23  ;;  %s258_s5 = sshll.u32 %s4094_s3, 4  ;;  %s259_s5 = int_to_ptr.vmem [resolvable:$true] %s258_s5 }
  0x41   : > { %s4265_s18 = scalar_lea.hbm %s5975_s1, %s5989_s25  ;;  %s333_s22 = sshll.u32 %s325_s19, 4  ;;  %s4268_s22 = int_to_ptr.vmem [resolvable:$true] %s333_s22 }
  0x42   : > { %s4270_s13 = scalar_lea.sflag [#allocation6], %s321_s14  ;;  %s3848_s29 = scalar_lea.hbm %s4265_s18, 640 }
  0x43   : > { %p3849_p0 = scmp.ne.s32.totalorder %s4265_s18, %s3848_s29  ;;  %p3850_p2 = pneg %p4255_p13 }
  0x44   : > { %s3853_s25 = scalar_lea.hbm %s5975_s1, 1280  ;;  %p3854_p10 = scmp.lt.s32.totalorder %s4265_s18, %s5975_s1 }
  0x45   : > { %p3851_p5 = pnand %p3850_p2, %p3849_p0  ;;  %p3855_p11 = scmp.lt.s32.totalorder %s3853_s25, %s3848_s29 }
  0x47   : > { %p3852_p8 = pneg %p3851_p5  ;;  %p3856_p12 = por %p3855_p11, %p3854_p10 }
  0x49   : > { %p3857_p1 = pnand %p3856_p12, %p3852_p8 }
  0x4b   : > { %3860 = shalt.err (!%p3857_p1)
}
  0x4c   : > { %s3861_s3 = scalar_lea.vmem %s4268_s22, 640  ;;  %s4095_s14 = smov [#allocation5]  }
  0x4d   : > { %p3862_p3 = scmp.ne.s32.totalorder %s4268_s22, %s3861_s3  ;;  %s3866_s9 = sshll.u32 %s4095_s14, 4  ;;  %s3867_s9 = int_to_ptr.vmem [resolvable:$false] %s3866_s9 }
  0x4e   : > { %s3868_s10 = scalar_lea.vmem %s3867_s9, 1280  ;;  %p3869_p4 = scmp.lt.s32.totalorder %s4268_s22, %s3867_s9 }
  0x4f   : > { %p3864_p0 = pnand %p3862_p3, %p3850_p2  ;;  %p3870_p9 = scmp.lt.s32.totalorder %s3868_s10, %s3861_s3 }
  0x51   : > { %p3865_p5 = pneg %p3864_p0  ;;  %p3871_p6 = por %p3870_p9, %p3869_p4 }
  0x53   : > { %p3872_p10 = pnand %p3871_p6, %p3865_p5 }
  0x55   : > { %3875 = shalt.err (!%p3872_p10)
}
  0x56   : > { %3659 = dma.hbm_to_vmem [thread:$0]  (!%p4255_p13), %s4265_s18, 640, %s4268_s22, %s4270_s13  }
  0x57   : > { %s3887_s29 = scalar_lea.vmem %s259_s5, 80  ;;  %s3894_s26 = scalar_lea.vmem %s259_s5, 96 }
  0x58   : > { %p3888_p1 = scmp.ne.s32.totalorder %s259_s5, %s3887_s29  ;;  %p3895_p11 = scmp.lt.s32.totalorder %s259_s5, %s259_s5 }
  0x59   : > { %p3896_p12 = scmp.lt.s32.totalorder %s3894_s26, %s3887_s29 }
  0x5a   : > { %p3890_p3 = pnand %p3888_p1, %p4196_p7 }
  0x5b   : > { %p3897_p0 = por %p3896_p12, %p3895_p11 }
  0x5c   : > { %p3891_p8 = pneg %p3890_p3 }
  0x5e   : > { %p3898_p4 = pnand %p3897_p0, %p3891_p8 }
  0x60   : > { %3901 = shalt.err (!%p3898_p4)
}
  0x61   : > { %p6021_p6 = scmp.ne.s32.totalorder %s6011_s15, 0  ;;  %s6022_s0 = sld [smem:[#allocation26_spill]] }
  0x62   : > { %s4096_s18 = smov [#allocation10]   ;;  %s4097_s3 = smov [#allocation13]  }
  0x63   : > { %s281_s22 = sshll.u32 %s4096_s18, 4  ;;  %s307_s14 = sshll.u32 %s4097_s3, 4  ;;  %s282_s22 = int_to_ptr.vmem [resolvable:$true] %s281_s22  ;;  %s308_s14 = int_to_ptr.vmem [resolvable:$true] %s307_s14 }
  0x64   : > { %s3913_s9 = scalar_lea.vmem %s282_s22, 512  ;;  %p3921_p1 = scmp.lt.s32.totalorder %s282_s22, %s282_s22 }
  0x65   : > { %p3914_p9 = scmp.ne.s32.totalorder %s282_s22, %s3913_s9  ;;  %p3922_p3 = scmp.lt.s32.totalorder %s3913_s9, %s3913_s9 }
  0x67   : > { %3643 = dma.hbm_to_vmem [thread:$0]  (!%p6021_p6), %s6022_s0, 80, %s259_s5, [#allocation3]  }
  0x68   : > { %p3916_p5 = pnand %p3914_p9, %p4196_p7  ;;  %p3923_p8 = por %p3922_p3, %p3921_p1 }
  0x6a   : > { %p3917_p10 = pneg %p3916_p5 }
  0x6c   : > { %p3924_p11 = pnand %p3923_p8, %p3917_p10 }
  0x6e   : > { %3927 = shalt.err (!%p3924_p11)
}
  0x6f   : > { %s6023_s10 = smov 8   ;;  %s6024_s29 = smov 128  }
  0x70   : > { %3649 = dma.hbm_to_vmem [thread:$0]  (!%p6021_p6), %s5978_s4, 512, %s282_s22, [#allocation9], %s6024_s29, %s6024_s29, %s6023_s10  }
  0x71   : > { %s3939_s25 = scalar_lea.vmem %s308_s14, 512  ;;  %p3947_p9 = scmp.lt.s32.totalorder %s308_s14, %s308_s14 }
  0x72   : > { %p3940_p12 = scmp.ne.s32.totalorder %s308_s14, %s3939_s25  ;;  %p3948_p5 = scmp.lt.s32.totalorder %s3939_s25, %s3939_s25 }
  0x74   : > { %p3942_p0 = pnand %p3940_p12, %p4196_p7  ;;  %p3949_p10 = por %p3948_p5, %p3947_p9 }
  0x76   : > { %p3943_p4 = pneg %p3942_p0 }
  0x78   : > { %p3950_p1 = pnand %p3949_p10, %p3943_p4 }
  0x7a   : > { %3953 = shalt.err (!%p3950_p1)
}
  0x7b   : > { %3655 = dma.hbm_to_vmem [thread:$0]  (!%p6021_p6), %s5980_s6, 512, %s308_s14, [#allocation12], %s6024_s29, %s6024_s29, %s6023_s10  }
  0x7c   : > { %s6025_s16 = smul.u32 640, %s4088_s30  ;;  %s344_s5 = scalar_lea.vmem [#allocation7], %s4253_s23 }
  0x7d   : > { %s352_s26 = sshll.u32 %s344_s5, 4  ;;  %s3959_s18 = scalar_lea.hbm %s5976_s2, 1280  ;;  %s353_s26 = int_to_ptr.vmem [resolvable:$true] %s352_s26 }
  0x7e   : > { %s350_s9 = scalar_lea.hbm %s5976_s2, %s6025_s16 }
  0x7f   : > { %s3954_s25 = scalar_lea.hbm %s350_s9, 640  ;;  %p3960_p6 = scmp.lt.s32.totalorder %s350_s9, %s5976_s2 }
  0x80   : > { %p3955_p7 = scmp.ne.s32.totalorder %s350_s9, %s3954_s25  ;;  %p3961_p11 = scmp.lt.s32.totalorder %s3959_s18, %s3954_s25 }
  0x82   : > { %p3957_p3 = pnand %p3955_p7, %p3850_p2  ;;  %p3962_p12 = por %p3961_p11, %p3960_p6 }
  0x84   : > { %p3958_p8 = pneg %p3957_p3 }
  0x86   : > { %p3963_p0 = pnand %p3962_p12, %p3958_p8 }
  0x88   : > { %3966 = shalt.err (!%p3963_p0)
}
  0x89   : > { %s3967_s23 = scalar_lea.vmem %s353_s26, 640  ;;  %s4098_s10 = smov [#allocation7]  }
  0x8a   : > { %p3968_p4 = scmp.ne.s32.totalorder %s353_s26, %s3967_s23  ;;  %s3972_s29 = sshll.u32 %s4098_s10, 4  ;;  %s3973_s29 = int_to_ptr.vmem [resolvable:$false] %s3972_s29 }
  0x8b   : > { %s3974_s16 = scalar_lea.vmem %s3973_s29, 1280  ;;  %p3975_p10 = scmp.lt.s32.totalorder %s353_s26, %s3973_s29 }
  0x8c   : > { %p3970_p9 = pnand %p3968_p4, %p3850_p2  ;;  %p3976_p1 = scmp.lt.s32.totalorder %s3974_s16, %s3967_s23 }
  0x8e   : > { %p3971_p5 = pneg %p3970_p9  ;;  %p3977_p7 = por %p3976_p1, %p3975_p10 }
  0x90   : > { %p3978_p3 = pnand %p3977_p7, %p3971_p5 }
  0x92   : > { %3981 = shalt.err (!%p3978_p3)
}
  0x93   : > { %3662 = dma.hbm_to_vmem [thread:$0]  (!%p4255_p13), %s350_s9, 640, %s353_s26, %s4270_s13  }
  0x94   : > { %p6026_p8 = scmp.ne.s32.totalorder %s6010_s12, 0 }
  0x95   : > { %p6027_p6 = scmp.eq.s32.totalorder (!%p6026_p8), %s4176_s11, 0 }
  0x96   : > { %361 = sbr.rel (%p6026_p8) target bundleno = 2202 (0x89a), region = 48 }
  0x9b   : > { %4051 = dma.done.wait (%p6027_p6), [#allocation3], 80   ;;  %p6028_p2 = pmov %p6027_p6 }
  0x9c   : > { %s367_s0 = sand.u32 1, %s4176_s11   ;;  %s4353_s22 = sand.u32 1, %s4080_s28  }
  0x9d   : > { %4053 = vsyncadd (%p6028_p2), [#allocation3], 4294967216  ;;  %s4356_s3 = smul.u32 40, %s4353_s22  ;;  %s368_s13 = scalar_lea.sflag [#allocation6], %s367_s0 }
  0x9e   : > { %p6029_p13 = scmp.ne.s32.totalorder %s6017_s17, 0 }
  0x9f   : > { %s4359_s24 = scalar_lea.vmem [#allocation5], %s4356_s3 }
  0xa0   : > { %4055 = dma.done.wait (%p6029_p13), %s368_s13, 1280  }
  0xa1   : > { %4057 = vsyncadd (%p6029_p13), %s368_s13, 4294966016  ;;  %s4366_s12 = scalar_lea.vmem [#allocation7], %s4356_s3  ;;  %p6030_p11 = pmov %p6028_p2 }
  0xa2   : > { %p6031_p12 = pmov %p6028_p2 }
  0xa3   : > { %4059 = dma.done.wait (%p6030_p11), [#allocation9], 1024  }
  0xa4   : > { %4061 = vsyncadd (%p6031_p12), [#allocation9], 4294966272  ;;  %p6032_p0 = pmov %p6028_p2 }
  0xa6   : > { %4063 = dma.done.wait (%p6032_p0), [#allocation12], 1024   ;;  %p6033_p4 = pmov %p6032_p0 }
  0xa7   : > { %v4099_v0 = vmov 1.0   ;;  %v4381_v1 = vld [vmem:[%s4366_s12 + $0x8] sm:$0xff]  ;;  %v4384_v2 = vld [vmem:[%s4366_s12] sm:$0xff]  ;;  %s4100_s17 = smov 124   ;;  %v4391_v3 = vld [vmem:[%s4366_s12 + $0x10] sm:$0xff]  ;;  %v4101_v7 = vmov 0.0   ;;  %v469_v12 = vlaneseq }
  0xa8   : > { %4065 = vsyncadd (%p6033_p4), [#allocation12], 4294966272  ;;  %608 = vmatprep.subr.mxu0 %v4099_v0  ;;  %685 = vmatprep.subr.mxu1 %v4099_v0  ;;  %v4394_v4 = vld [vmem:[%s4359_s24 + $0x8] sm:$0xff]  ;;  %v4401_v5 = vld [vmem:[%s4359_s24 + $0x10] sm:$0xff]  ;;  %s4102_s9 = smov 125   ;;  %s4103_s5 = smov 126  }
  0xa9   : > { %609 = vmatpush1.msra.mxu0 %v4099_v0  ;;  %686 = vmatpush1.msra.mxu1 %v4099_v0  ;;  %v4404_v6 = vld [vmem:[%s4359_s24] sm:$0xff]  ;;  %v4425_v8 = vld [vmem:[%s4366_s12 + $0x18] sm:$0xff]  ;;  %v4428_v9 = vld [vmem:[%s4366_s12 + $0x20] sm:$0xff]  ;;  %s4104_s26 = smov 127   ;;  %v4493_v13 = vand.u32 127, %v469_v12  ;;  %vm6000_vm2 = vcmask 326656  }
  0xaa   : > { %552 = vrot.lane.b32.xlu0 %v4381_v1, %s4100_s17  ;;  %548 = vrot.lane.b32.xlu1 %v4384_v2, %s4100_s17  ;;  %v4435_v10 = vld [vmem:[%s4359_s24 + $0x18] sm:$0xff]  ;;  %v4438_v11 = vld [vmem:[%s4359_s24 + $0x20] sm:$0xff]  ;;  %vm5999_vm5 = vcmask 392192   ;;  %vm5998_vm6 = vcmask 195584   ;;  %vm5997_vm7 = vcmask 261120   ;;  %s4105_s25 = smov 3  }
  0xab   : > { %650 = vmatprep.mubr.f32.mxu0 %v4101_v7  ;;  %727 = vmatprep.mubr.f32.mxu1 %v4101_v7  ;;  %vm6001_vm0 = vcmp.lt.s32.totalorder %v4493_v13, 124  ;;  %vm535_vm1 = vcmp.lt.s32.totalorder %v4493_v13, 125  ;;  %v577_v34 = vld [vmem:[#allocation10] sm:$0xff]  ;;  %v578_v40 = vld [vmem:[#allocation10 + $0x8] sm:$0xff]  ;;  %vm502_vm3 = vcmp.lt.s32.totalorder %v4493_v13, 126  ;;  %vm471_vm4 = vcmp.lt.s32.totalorder %v4493_v13, 127 }
  0xac   : > { %vm1637_vm8 = vcmp.lt.s32.totalorder %v4493_v13, 3  ;;  %s4106_s15 = smov 1   ;;  %s4107_s19 = smov 2   ;;  %vm1769_vm10 = vcmp.lt.s32.totalorder %v4493_v13, 1  ;;  %vm1860_vm13 = vcmp.lt.s32.totalorder %v4493_v13, 2 }
  0xad   : > { %s5853_s18 = scalar_lea.vmem [#allocation14], %s4356_s3  ;;  %s5865_s14 = scalar_lea.vmem [#allocation15], %s4356_s3 }
  0xae   : > { %556 = vrot.lane.b32.xlu0 %v4391_v3, %s4100_s17  ;;  %550 = vrot.lane.b32.xlu1 %v4394_v4, %s4100_s17  ;;  %s3610_s23 = smul.u32 640, %s4176_s11  ;;  %s3203_s10 = sshll.u32 %s5853_s18, 4  ;;  %s5893_s10 = int_to_ptr.vmem [resolvable:$true] %s3203_s10 }
  0xaf   : > { %s3217_s3 = sshll.u32 %s5865_s14, 4  ;;  %s3184_s13 = scalar_lea.sflag [#allocation4], %s4353_s22  ;;  %s3218_s3 = int_to_ptr.vmem [resolvable:$true] %s3217_s3 }
  0xb0   : > { %s5891_s0 = scalar_lea.hbm %s5981_s7, %s3610_s23  ;;  %p6072_p5 = scmp.ne.s32.totalorder %s6018_s20, 0 }
  0xb2   : > { %554 = vrot.lane.b32.xlu0 %v4401_v5, %s4100_s17  ;;  %546 = vrot.lane.b32.xlu1 %v4404_v6, %s4100_s17 }
  0xb6   : > { %521 = vrot.lane.b32.xlu0 %v4381_v1, %s4102_s9  ;;  %525 = vrot.lane.b32.xlu1 %v4391_v3, %s4102_s9 }
  0xba   : > { %517 = vrot.lane.b32.xlu0 %v4384_v2, %s4102_s9  ;;  %519 = vrot.lane.b32.xlu1 %v4394_v4, %s4102_s9 }
  0xbe   : > { %523 = vrot.lane.b32.xlu0 %v4401_v5, %s4102_s9  ;;  %515 = vrot.lane.b32.xlu1 %v4404_v6, %s4102_s9 }
  0xc2   : > { %560 = vrot.lane.b32.xlu0 %v4425_v8, %s4100_s17  ;;  %564 = vrot.lane.b32.xlu1 %v4428_v9, %s4100_s17 }
  0xc6   : > { %558 = vrot.lane.b32.xlu0 %v4435_v10, %s4100_s17  ;;  %562 = vrot.lane.b32.xlu1 %v4438_v11, %s4100_s17 }
  0xca   : > { %529 = vrot.lane.b32.xlu0 %v4425_v8, %s4102_s9  ;;  %533 = vrot.lane.b32.xlu1 %v4428_v9, %s4102_s9 }
  0xce   : > { %527 = vrot.lane.b32.xlu0 %v4435_v10, %s4102_s9  ;;  %531 = vrot.lane.b32.xlu1 %v4438_v11, %s4102_s9 }
  0xd2   : > { %488 = vrot.lane.b32.xlu0 %v4381_v1, %s4103_s5  ;;  %492 = vrot.lane.b32.xlu1 %v4391_v3, %s4103_s5 }
  0xd6   : > { %484 = vrot.lane.b32.xlu0 %v4384_v2, %s4103_s5  ;;  %486 = vrot.lane.b32.xlu1 %v4394_v4, %s4103_s5 }
  0xda   : > { %490 = vrot.lane.b32.xlu0 %v4401_v5, %s4103_s5  ;;  %496 = vrot.lane.b32.xlu1 %v4425_v8, %s4103_s5 }
  0xde   : > { %500 = vrot.lane.b32.xlu0 %v4428_v9, %s4103_s5  ;;  %482 = vrot.lane.b32.xlu1 %v4404_v6, %s4103_s5 }
  0xe2   : > { %455 = vrot.lane.b32.xlu0 %v4381_v1, %s4104_s26  ;;  %459 = vrot.lane.b32.xlu1 %v4391_v3, %s4104_s26 }
  0xe6   : > { %494 = vrot.lane.b32.xlu0 %v4435_v10, %s4103_s5  ;;  %498 = vrot.lane.b32.xlu1 %v4438_v11, %s4103_s5 }
  0xea   : > { %451 = vrot.lane.b32.xlu0 %v4384_v2, %s4104_s26  ;;  %453 = vrot.lane.b32.xlu1 %v4394_v4, %s4104_s26 }
  0xee   : > { %457 = vrot.lane.b32.xlu0 %v4401_v5, %s4104_s26  ;;  %463 = vrot.lane.b32.xlu1 %v4425_v8, %s4104_s26 }
  0xf2   : > { %467 = vrot.lane.b32.xlu0 %v4428_v9, %s4104_s26  ;;  %449 = vrot.lane.b32.xlu1 %v4404_v6, %s4104_s26 }
  0xf6   : > { %461 = vrot.lane.b32.xlu0 %v4435_v10, %s4104_s26  ;;  %465 = vrot.lane.b32.xlu1 %v4438_v11, %s4104_s26 }
 0x11c   : > { %v553_v14 = vpop.permute.xlu0 %552  ;;  %v549_v15 = vpop.permute.xlu1 %548 }
 0x11d   : > { %v574_v19 = vsel %vm6001_vm0, %v549_v15, %v553_v14 }
 0x120   : > { %v557_v16 = vpop.permute.xlu0 %556  ;;  %v551_v17 = vpop.permute.xlu1 %550 }
 0x121   : > { %v572_v18 = vsel %vm6001_vm0, %v553_v14, %v557_v16 }
 0x122   : > { %610 = vmatprep.subr.mxu0 %v572_v18 }
 0x123   : > { %611 = vmatpush1.msra.mxu0 %v574_v19 }
 0x124   : > { %v555_v20 = vpop.permute.xlu0 %554  ;;  %v547_v21 = vpop.permute.xlu1 %546 }
 0x125   : > { %v571_v22 = vsel %vm6001_vm0, %v551_v17, %v555_v20  ;;  %v573_v23 = vsel %vm6001_vm0, %v547_v21, %v551_v17 }
 0x126   : > { %612 = vmatprep.subr.mxu0 %v571_v22 }
 0x127   : > { %613 = vmatpush1.msra.mxu0 %v573_v23 }
 0x128   : > { %v522_v24 = vpop.permute.xlu0 %521  ;;  %v526_v25 = vpop.permute.xlu1 %525 }
 0x129   : > { %v541_v26 = vsel %vm535_vm1, %v522_v24, %v526_v25 }
 0x12a   : > { %614 = vmatprep.subr.mxu0 %v541_v26 }
 0x12c   : > { %v518_v27 = vpop.permute.xlu0 %517  ;;  %v520_v28 = vpop.permute.xlu1 %519 }
 0x12d   : > { %v543_v29 = vsel %vm535_vm1, %v518_v27, %v522_v24 }
 0x12e   : > { %615 = vmatpush1.msra.mxu0 %v543_v29 }
 0x130   : > { %v524_v30 = vpop.permute.xlu0 %523  ;;  %v516_v31 = vpop.permute.xlu1 %515 }
 0x131   : > { %v540_v32 = vsel %vm535_vm1, %v520_v28, %v524_v30  ;;  %v542_v33 = vsel %vm535_vm1, %v516_v31, %v520_v28 }
 0x132   : > { %616 = vmatprep.subr.mxu0 %v540_v32 }
 0x133   : > { %617 = vmatpush1.msra.mxu0 %v542_v33 }
 0x134   : > { %v561_v35 = vpop.permute.xlu0 %560  ;;  %3509 = vmatprep.subr.mxu0 %v4099_v0  ;;  %v565_v36 = vpop.permute.xlu1 %564  ;;  %3405 = vmatmul.mubr.msk.f32.vlgmr.msra.gmra.mxu0 %vm6000_vm2, %v577_v34 }
 0x135   : > { %3510 = vmatpush3.msra.mxu0 %v4099_v0  ;;  %v568_v37 = vsel %vm6001_vm0, %v561_v35, %v565_v36  ;;  %v576_v38 = vsel %vm6001_vm0, %v565_v36, %v549_v15  ;;  %v570_v39 = vsel %vm6001_vm0, %v557_v16, %v561_v35  ;;  %656 = vmatprep.mubr.f32.mxu0 %v4101_v7 }
 0x136   : > { %687 = vmatprep.subr.mxu1 %v568_v37  ;;  %3511 = vmatprep.subr.mxu0 %v576_v38 }
 0x137   : > { %688 = vmatpush1.msra.mxu1 %v570_v39  ;;  %3512 = vmatpush3.msra.mxu0 %v576_v38 }
 0x138   : > { %v559_v41 = vpop.permute.xlu0 %558  ;;  %v563_v42 = vpop.permute.xlu1 %562  ;;  %3406 = vmatmul.mubr.msk.f32.gmra.mxu0 %vm6000_vm2, %v578_v40 }
 0x139   : > { %v567_v43 = vsel %vm6001_vm0, %v559_v41, %v563_v42  ;;  %v575_v44 = vsel %vm6001_vm0, %v563_v42, %v547_v21  ;;  %v569_v45 = vsel %vm6001_vm0, %v555_v20, %v559_v41  ;;  %3519 = vmatprep.mubr.msk.f32.mxu0 %vm6000_vm2, %v577_v34 }
 0x13a   : > { %689 = vmatprep.subr.mxu1 %v567_v43  ;;  %3513 = vmatprep.subr.mxu0 %v575_v44 }
 0x13b   : > { %690 = vmatpush1.msra.mxu1 %v569_v45  ;;  %3514 = vmatpush3.msra.mxu0 %v575_v44  ;;  %v514_v44 = vld [vmem:[#allocation8 + $0x8] sm:$0xff] }
 0x13c   : > { %v530_v46 = vpop.permute.xlu0 %529  ;;  %v534_v47 = vpop.permute.xlu1 %533 }
 0x13d   : > { %v537_v48 = vsel %vm535_vm1, %v530_v46, %v534_v47  ;;  %v545_v49 = vsel %vm535_vm1, %v534_v47, %v518_v27  ;;  %v539_v50 = vsel %vm535_vm1, %v526_v25, %v530_v46 }
 0x13e   : > { %691 = vmatprep.subr.mxu1 %v537_v48  ;;  %3515 = vmatprep.subr.mxu0 %v545_v49 }
 0x13f   : > { %692 = vmatpush1.msra.mxu1 %v539_v50  ;;  %3516 = vmatpush3.msra.mxu0 %v545_v49 }
 0x140   : > { %v528_v51 = vpop.permute.xlu0 %527  ;;  %v532_v52 = vpop.permute.xlu1 %531 }
 0x141   : > { %v536_v53 = vsel %vm535_vm1, %v528_v51, %v532_v52  ;;  %v544_v54 = vsel %vm535_vm1, %v532_v52, %v516_v31  ;;  %v538_v55 = vsel %vm535_vm1, %v524_v30, %v528_v51 }
 0x142   : > { %693 = vmatprep.subr.mxu1 %v536_v53  ;;  %3517 = vmatprep.subr.mxu0 %v544_v54 }
 0x143   : > { %694 = vmatpush1.msra.mxu1 %v538_v55  ;;  %3518 = vmatpush3.msra.mxu0 %v544_v54 }
 0x144   : > { %v489_v56 = vpop.permute.xlu0 %488  ;;  %v493_v57 = vpop.permute.xlu1 %492  ;;  %3407 = vmatmul.mubr.msk.f32.vlgmr.msra.gmra.mxu1 %vm6000_vm2, %v577_v34  ;;  %3520 = vmatmul.mubr.msk.f32.vlgmr.msra.gmra.mxu0 %vm6000_vm2, %v578_v40 }
 0x145   : > { %v508_v58 = vsel %vm502_vm3, %v489_v56, %v493_v57  ;;  %733 = vmatprep.mubr.f32.mxu1 %v4101_v7  ;;  %963 = vmatprep.mubr.f32.mxu0 %v4101_v7 }
 0x146   : > { %842 = vmatprep.subr.mxu1 %v508_v58 }
 0x148   : > { %v485_v59 = vpop.permute.xlu0 %484  ;;  %v487_v60 = vpop.permute.xlu1 %486  ;;  %3408 = vmatmul.mubr.msk.f32.gmra.mxu1 %vm6000_vm2, %v578_v40  ;;  %v513_v40 = vld [vmem:[#allocation8] sm:$0xff] }
 0x149   : > { %v510_v61 = vsel %vm502_vm3, %v485_v59, %v489_v56  ;;  %886 = vmatprep.mubr.f32.mxu1 %v4101_v7 }
 0x14a   : > { %843 = vmatpush1.msra.mxu1 %v510_v61 }
 0x14c   : > { %v491_v62 = vpop.permute.xlu0 %490  ;;  %v497_v63 = vpop.permute.xlu1 %496 }
 0x14d   : > { %v507_v14 = vsel %vm502_vm3, %v487_v60, %v491_v62  ;;  %v506_v19 = vsel %vm502_vm3, %v493_v57, %v497_v63 }
 0x14e   : > { %844 = vmatprep.subr.mxu1 %v507_v14 }
 0x150   : > { %v501_v15 = vpop.permute.xlu0 %500  ;;  %v483_v16 = vpop.permute.xlu1 %482 }
 0x151   : > { %v509_v17 = vsel %vm502_vm3, %v483_v16, %v487_v60  ;;  %v504_v18 = vsel %vm502_vm3, %v497_v63, %v501_v15 }
 0x152   : > { %845 = vmatpush1.msra.mxu1 %v509_v17  ;;  %919 = vmatprep.subr.mxu0 %v504_v18 }
 0x153   : > { %920 = vmatpush1.msra.mxu0 %v506_v19 }
 0x154   : > { %v456_v20 = vpop.permute.xlu0 %455  ;;  %v460_v21 = vpop.permute.xlu1 %459 }
 0x155   : > { %v477_v22 = vsel %vm471_vm4, %v456_v20, %v460_v21 }
 0x156   : > { %846 = vmatprep.subr.mxu1 %v477_v22 }
 0x158   : > { %v495_v23 = vpop.permute.xlu0 %494  ;;  %v499_v24 = vpop.permute.xlu1 %498 }
 0x159   : > { %v503_v25 = vsel %vm502_vm3, %v495_v23, %v499_v24  ;;  %v505_v26 = vsel %vm502_vm3, %v491_v62, %v495_v23  ;;  %v511_v43 = vsel %vm502_vm3, %v499_v24, %v483_v16 }
 0x15a   : > { %921 = vmatprep.subr.mxu0 %v503_v25 }
 0x15b   : > { %922 = vmatpush1.msra.mxu0 %v505_v26 }
 0x15c   : > { %v452_v27 = vpop.permute.xlu0 %451  ;;  %v454_v28 = vpop.permute.xlu1 %453 }
 0x15d   : > { %v479_v29 = vsel %vm471_vm4, %v452_v27, %v456_v20 }
 0x15e   : > { %847 = vmatpush1.msra.mxu1 %v479_v29 }
 0x160   : > { %v458_v30 = vpop.permute.xlu0 %457  ;;  %v464_v31 = vpop.permute.xlu1 %463 }
 0x161   : > { %v476_v32 = vsel %vm471_vm4, %v454_v28, %v458_v30  ;;  %v475_v37 = vsel %vm471_vm4, %v460_v21, %v464_v31 }
 0x162   : > { %848 = vmatprep.subr.mxu1 %v476_v32 }
 0x164   : > { %v468_v33 = vpop.permute.xlu0 %467  ;;  %v450_v34 = vpop.permute.xlu1 %449 }
 0x165   : > { %v478_v35 = vsel %vm471_vm4, %v450_v34, %v454_v28  ;;  %v473_v36 = vsel %vm471_vm4, %v464_v31, %v468_v33 }
 0x166   : > { %849 = vmatpush1.msra.mxu1 %v478_v35  ;;  %923 = vmatprep.subr.mxu0 %v473_v36 }
 0x167   : > { %850 = vmatprep.subr.mxu1 %v4381_v1  ;;  %924 = vmatpush1.msra.mxu0 %v475_v37 }
 0x168   : > { %v462_v38 = vpop.permute.xlu0 %461  ;;  %851 = vmatpush1.msra.mxu1 %v4384_v2  ;;  %v466_v39 = vpop.permute.xlu1 %465  ;;  %v512_v2 = vsel %vm502_vm3, %v501_v15, %v485_v59 }
 0x169   : > { %852 = vmatprep.subr.mxu1 %v4394_v4  ;;  %v472_v41 = vsel %vm471_vm4, %v462_v38, %v466_v39  ;;  %v474_v42 = vsel %vm471_vm4, %v458_v30, %v462_v38  ;;  %v480_v45 = vsel %vm471_vm4, %v466_v39, %v450_v34 }
 0x16a   : > { %853 = vmatpush1.msra.mxu1 %v4404_v6  ;;  %925 = vmatprep.subr.mxu0 %v472_v41  ;;  %v481_v6 = vsel %vm471_vm4, %v468_v33, %v452_v27 }
 0x16b   : > { %3411 = vmatmul.mubr.msk.f32.vlgmr.msra.gmra.mxu1 %vm5999_vm5, %v513_v40  ;;  %926 = vmatpush1.msra.mxu0 %v474_v42 }
 0x16c   : > { %3522 = vmatprep.subr.mxu1 %v512_v2  ;;  %927 = vmatprep.subr.mxu0 %v4425_v8 }
 0x16d   : > { %3523 = vmatpush3.msra.mxu1 %v512_v2  ;;  %928 = vmatpush1.msra.mxu0 %v4391_v3 }
 0x16e   : > { %3524 = vmatprep.subr.mxu1 %v511_v43  ;;  %892 = vmatprep.mubr.f32.mxu1 %v4101_v7 }
 0x16f   : > { %929 = vmatprep.subr.mxu0 %v4435_v10  ;;  %3525 = vmatpush3.msra.mxu1 %v511_v43 }
 0x170   : > { %3412 = vmatmul.mubr.msk.f32.gmra.mxu1 %vm5999_vm5, %v514_v44  ;;  %930 = vmatpush1.msra.mxu0 %v4401_v5 }
 0x171   : > { %3526 = vmatprep.subr.mxu1 %v481_v6  ;;  %3413 = vmatmul.mubr.msk.f32.vlgmr.msra.gmra.mxu0 %vm5999_vm5, %v513_v40 }
 0x172   : > { %3527 = vmatpush3.msra.mxu1 %v481_v6  ;;  %969 = vmatprep.mubr.f32.mxu0 %v4101_v7 }
 0x173   : > { %3528 = vmatprep.subr.mxu1 %v480_v45  ;;  %3534 = vmatprep.mubr.msk.f32.mxu1 %vm5999_vm5, %v513_v40 }
 0x174   : > { %3529 = vmatpush3.msra.mxu1 %v480_v45  ;;  %1168 = vmatprep.subr.mxu0 %v4099_v0 }
 0x175   : > { %3530 = vmatprep.subr.mxu1 %v4428_v9  ;;  %3414 = vmatmul.mubr.msk.f32.gmra.mxu0 %vm5999_vm5, %v514_v44 }
 0x176   : > { %3531 = vmatpush3.msra.mxu1 %v4428_v9  ;;  %1169 = vmatpush1.msra.mxu0 %v4099_v0 }
 0x177   : > { %3532 = vmatprep.subr.mxu1 %v4438_v11  ;;  %1206 = vmatprep.mubr.f32.mxu0 %v4101_v7 }
 0x178   : > { %3533 = vmatpush3.msra.mxu1 %v4438_v11 }
 0x179   : > { %3535 = vmatmul.mubr.msk.f32.vlgmr.msra.gmra.mxu1 %vm5999_vm5, %v514_v44  ;;  %1245 = vmatprep.subr.mxu1 %v4099_v0 }
 0x17a   : > { %1246 = vmatpush1.msra.mxu1 %v4099_v0  ;;  %1283 = vmatprep.mubr.f32.mxu1 %v4101_v7 }
 0x1f4   : > { %v652_v5 = vpop.f32.mrf.mxu0 }
 0x1f6   : > { %v654_v10 = vpop.f32.mrf.mxu0 }
 0x1f8   : > { %v658_v9 = vpop.f32.mrf.mxu0 }
 0x1fa   : > { %v660_v49 = vpop.f32.mrf.mxu0 }
 0x204   : > { %v729_v46 = vpop.f32.mrf.mxu1  ;;  %v3521_v51 = vpop.f32.mrf.mxu0 }
 0x206   : > { %v731_v47 = vpop.f32.mrf.mxu1  ;;  %v806_v54 = vpop.f32.mrf.mxu0 }
 0x208   : > { %v735_v48 = vpop.f32.mrf.mxu1 }
 0x20a   : > { %v737_v50 = vpop.f32.mrf.mxu1 }
 0x22b   : > { %v888_v52 = vpop.f32.mrf.mxu1 }
 0x22c   : > { %v889_v53 = vadd.f32 %v888_v52, %v652_v5 }
 0x22d   : > { %v890_v11 = vpop.f32.mrf.mxu1 }
 0x22e   : > { %v1051_v55 = vmul.f32 0.01, %v889_v53  ;;  %v891_v56 = vadd.f32 %v890_v11, %v654_v10 }
 0x230   : > { %v4617_v57 = vmax.f32 %v889_v53, %v1051_v55  ;;  %v1052_v58 = vmul.f32 0.01, %v891_v56  ;;  %v894_v59 = vpop.f32.mrf.mxu1  ;;  %v1134_v55 = vld [vmem:[#allocation13 + $0x8] sm:$0xff] }
 0x231   : > { %v895_v60 = vadd.f32 %v894_v59, %v658_v9  ;;  %v965_v61 = vpop.f32.mrf.mxu0 }
 0x232   : > { %v896_v62 = vpop.f32.mrf.mxu1  ;;  %1103 = vrot.lane.b32.xlu1 %v4617_v57, %s4103_s5  ;;  %v4621_v15 = vmax.f32 %v891_v56, %v1052_v58  ;;  %v966_v25 = vadd.f32 %v965_v61, %v729_v46 }
 0x233   : > { %v1056_v63 = vmul.f32 0.01, %v895_v60  ;;  %v967_v14 = vpop.f32.mrf.mxu0  ;;  %v897_v17 = vadd.f32 %v896_v62, %v660_v49 }
 0x234   : > { %v1053_v30 = vmul.f32 0.01, %v966_v25  ;;  %v968_v31 = vadd.f32 %v967_v14, %v731_v47 }
 0x235   : > { %v4623_v16 = vmax.f32 %v895_v60, %v1056_v63  ;;  %v971_v18 = vpop.f32.mrf.mxu0  ;;  %v1057_v19 = vmul.f32 0.01, %v897_v17 }
 0x236   : > { %1107 = vrot.lane.b32.xlu1 %v4621_v15, %s4103_s5  ;;  %v972_v21 = vadd.f32 %v971_v18, %v735_v48  ;;  %v4647_v34 = vmax.f32 %v966_v25, %v1053_v30  ;;  %v1054_v35 = vmul.f32 0.01, %v968_v31 }
 0x237   : > { %1105 = vrot.lane.b32.xlu0 %v4623_v16, %s4103_s5  ;;  %v4633_v26 = vmax.f32 %v897_v17, %v1057_v19  ;;  %v973_v36 = vpop.f32.mrf.mxu0 }
 0x238   : > { %v1058_v27 = vmul.f32 0.01, %v972_v21  ;;  %v4655_v38 = vmax.f32 %v968_v31, %v1054_v35  ;;  %v974_v39 = vadd.f32 %v973_v36, %v737_v50  ;;  %v1101_v31 = vld [vmem:[#allocation11] sm:$0xff] }
 0x239   : > { %v3536_v20 = vpop.f32.mrf.mxu1 }
 0x23a   : > { %v1048_v22 = vadd.f32 %v3536_v20, %v3521_v51  ;;  %1075 = vrot.lane.b32.xlu1 %v4621_v15, %s4104_s26  ;;  %v4641_v32 = vmax.f32 %v972_v21, %v1058_v27  ;;  %v1059_v40 = vmul.f32 0.01, %v974_v39  ;;  %v1133_v51 = vld [vmem:[#allocation13] sm:$0xff] }
 0x23b   : > { %v1042_v23 = vpop.f32.mrf.mxu1  ;;  %1073 = vrot.lane.b32.xlu0 %v4623_v16, %s4104_s26 }
 0x23c   : > { %v1060_v24 = vmul.f32 0.01, %v1048_v22  ;;  %v1043_v29 = vadd.f32 %v1042_v23, %v806_v54  ;;  %v4665_v41 = vmax.f32 %v974_v39, %v1059_v40 }
 0x23e   : > { %v4635_v28 = vmax.f32 %v1048_v22, %v1060_v24  ;;  %v1055_v33 = vmul.f32 0.01, %v1043_v29 }
 0x23f   : > { %1109 = vrot.lane.b32.xlu0 %v4633_v26, %s4103_s5 }
 0x240   : > { %1121 = vrot.lane.b32.xlu1 %v4635_v28, %s4103_s5  ;;  %v4649_v37 = vmax.f32 %v1043_v29, %v1055_v33 }
 0x243   : > { %1077 = vrot.lane.b32.xlu0 %v4633_v26, %s4104_s26 }
 0x244   : > { %1113 = vrot.lane.b32.xlu1 %v4641_v32, %s4103_s5 }
 0x247   : > { %1111 = vrot.lane.b32.xlu0 %v4647_v34, %s4103_s5 }
 0x248   : > { %1119 = vrot.lane.b32.xlu1 %v4649_v37, %s4103_s5 }
 0x24b   : > { %1115 = vrot.lane.b32.xlu0 %v4655_v38, %s4103_s5 }
 0x24c   : > { %1081 = vrot.lane.b32.xlu1 %v4641_v32, %s4104_s26 }
 0x24f   : > { %1089 = vrot.lane.b32.xlu0 %v4635_v28, %s4104_s26 }
 0x250   : > { %1071 = vrot.lane.b32.xlu1 %v4617_v57, %s4104_s26 }
 0x253   : > { %1117 = vrot.lane.b32.xlu0 %v4665_v41, %s4103_s5 }
 0x254   : > { %1085 = vrot.lane.b32.xlu1 %v4665_v41, %s4104_s26 }
 0x257   : > { %1079 = vrot.lane.b32.xlu0 %v4647_v34, %s4104_s26 }
 0x258   : > { %1087 = vrot.lane.b32.xlu1 %v4649_v37, %s4104_s26 }
 0x25b   : > { %1083 = vrot.lane.b32.xlu0 %v4655_v38, %s4104_s26 }
 0x2a4   : > { %v1104_v42 = vpop.permute.xlu1 %1103 }
 0x2a8   : > { %v1108_v2 = vpop.permute.xlu1 %1107 }
 0x2a9   : > { %v1106_v43 = vpop.permute.xlu0 %1105  ;;  %v1129_v52 = vsel %vm502_vm3, %v1104_v42, %v1108_v2 }
 0x2ac   : > { %v4677_v44 = vpop.permute.xlu1 %1075 }
 0x2ad   : > { %v4679_v6 = vpop.permute.xlu0 %1073 }
 0x2b1   : > { %v1110_v45 = vpop.permute.xlu0 %1109 }
 0x2b2   : > { %v1122_v5 = vpop.permute.xlu1 %1121  ;;  %v1130_v47 = vsel %vm502_vm3, %v1106_v43, %v1110_v45 }
 0x2b3   : > { %v1132_v54 = vsel %vm502_vm3, %v1122_v5, %v1106_v43 }
 0x2b5   : > { %v1078_v10 = vpop.permute.xlu0 %1077 }
 0x2b6   : > { %v1114_v46 = vpop.permute.xlu1 %1113  ;;  %v1098_v22 = vsel %vm471_vm4, %v4679_v6, %v1078_v10 }
 0x2b7   : > { %v1128_v9 = vsel %vm502_vm3, %v1110_v45, %v1114_v46 }
 0x2b8   : > { %1170 = vmatprep.subr.mxu0 %v1128_v9 }
 0x2b9   : > { %1171 = vmatpush1.msra.mxu0 %v1130_v47  ;;  %v1112_v48 = vpop.permute.xlu0 %1111 }
 0x2ba   : > { %v1120_v49 = vpop.permute.xlu1 %1119  ;;  %v1127_v50 = vsel %vm502_vm3, %v1108_v2, %v1112_v48 }
 0x2bb   : > { %1172 = vmatprep.subr.mxu0 %v1127_v50  ;;  %v1131_v56 = vsel %vm502_vm3, %v1120_v49, %v1104_v42 }
 0x2bc   : > { %1173 = vmatpush1.msra.mxu0 %v1129_v52 }
 0x2bd   : > { %v1116_v53 = vpop.permute.xlu0 %1115  ;;  %3537 = vmatprep.subr.mxu0 %v4099_v0  ;;  %3417 = vmatmul.mubr.msk.f32.vlgmr.msra.gmra.mxu0 %vm5998_vm6, %v1133_v51 }
 0x2be   : > { %v1082_v11 = vpop.permute.xlu1 %1081  ;;  %3538 = vmatpush3.msra.mxu0 %v4099_v0  ;;  %1212 = vmatprep.mubr.f32.mxu0 %v4101_v7  ;;  %v1123_v18 = vsel %vm502_vm3, %v1116_v53, %v1120_v49  ;;  %v1125_v20 = vsel %vm502_vm3, %v1112_v48, %v1116_v53 }
 0x2bf   : > { %3539 = vmatprep.subr.mxu0 %v1132_v54  ;;  %v1096_v21 = vsel %vm471_vm4, %v1078_v10, %v1082_v11 }
 0x2c0   : > { %3540 = vmatpush3.msra.mxu0 %v1132_v54 }
 0x2c1   : > { %v1090_v58 = vpop.permute.xlu0 %1089  ;;  %3541 = vmatprep.subr.mxu0 %v1131_v56  ;;  %3418 = vmatmul.mubr.msk.f32.gmra.mxu0 %vm5998_vm6, %v1134_v55 }
 0x2c2   : > { %v1072_v59 = vpop.permute.xlu1 %1071  ;;  %3542 = vmatpush3.msra.mxu0 %v1131_v56  ;;  %3543 = vmatprep.mubr.msk.f32.mxu0 %vm5998_vm6, %v1133_v51 }
 0x2c3   : > { %v1097_v27 = vsel %vm471_vm4, %v1072_v59, %v4677_v44 }
 0x2c5   : > { %v1118_v60 = vpop.permute.xlu0 %1117  ;;  %3544 = vmatmul.mubr.msk.f32.vlgmr.msra.gmra.mxu0 %vm5998_vm6, %v1134_v55 }
 0x2c6   : > { %v1086_v61 = vpop.permute.xlu1 %1085  ;;  %v1124_v62 = vsel %vm502_vm3, %v1118_v60, %v1122_v5  ;;  %v1126_v63 = vsel %vm502_vm3, %v1114_v46, %v1118_v60  ;;  %1519 = vmatprep.mubr.f32.mxu0 %v4101_v7 }
 0x2c7   : > { %1247 = vmatprep.subr.mxu1 %v1124_v62  ;;  %v1092_v14 = vsel %vm471_vm4, %v1086_v61, %v1090_v58  ;;  %v1094_v17 = vsel %vm471_vm4, %v1082_v11, %v1086_v61 }
 0x2c8   : > { %1479 = vmatprep.subr.mxu0 %v1092_v14  ;;  %1248 = vmatpush1.msra.mxu1 %v1126_v63 }
 0x2c9   : > { %1480 = vmatpush1.msra.mxu0 %v1094_v17  ;;  %v1080_v19 = vpop.permute.xlu0 %1079  ;;  %1249 = vmatprep.subr.mxu1 %v1123_v18 }
 0x2ca   : > { %1250 = vmatpush1.msra.mxu1 %v1125_v20  ;;  %v1095_v23 = vsel %vm471_vm4, %v4677_v44, %v1080_v19  ;;  %v1088_v24 = vpop.permute.xlu1 %1087 }
 0x2cb   : > { %3419 = vmatmul.mubr.msk.f32.vlgmr.msra.gmra.mxu1 %vm5998_vm6, %v1133_v51  ;;  %1402 = vmatprep.subr.mxu1 %v1096_v21 }
 0x2cc   : > { %1403 = vmatpush1.msra.mxu1 %v1098_v22  ;;  %1289 = vmatprep.mubr.f32.mxu1 %v4101_v7 }
 0x2cd   : > { %v1084_v25 = vpop.permute.xlu0 %1083  ;;  %1404 = vmatprep.subr.mxu1 %v1095_v23 }
 0x2ce   : > { %1405 = vmatpush1.msra.mxu1 %v1097_v27  ;;  %v1091_v29 = vsel %vm471_vm4, %v1084_v25, %v1088_v24  ;;  %v1093_v30 = vsel %vm471_vm4, %v1080_v19, %v1084_v25 }
 0x2cf   : > { %3420 = vmatmul.mubr.msk.f32.gmra.mxu1 %vm5998_vm6, %v1134_v55  ;;  %1406 = vmatprep.subr.mxu1 %v4633_v26 }
 0x2d0   : > { %1481 = vmatprep.subr.mxu0 %v1091_v29  ;;  %1407 = vmatpush1.msra.mxu1 %v4623_v16  ;;  %v1100_v16 = vsel %vm471_vm4, %v1090_v58, %v4679_v6 }
 0x2d1   : > { %1482 = vmatpush1.msra.mxu0 %v1093_v30  ;;  %1408 = vmatprep.subr.mxu1 %v4621_v15  ;;  %v1102_v15 = vld [vmem:[#allocation11 + $0x8] sm:$0xff] }
 0x2d2   : > { %1483 = vmatprep.subr.mxu0 %v4665_v41  ;;  %1409 = vmatpush1.msra.mxu1 %v4617_v57  ;;  %v1099_v57 = vsel %vm471_vm4, %v1088_v24, %v1072_v59 }
 0x2d3   : > { %1442 = vmatprep.mubr.f32.mxu1 %v4101_v7  ;;  %1484 = vmatpush1.msra.mxu0 %v4641_v32 }
 0x2d4   : > { %3423 = vmatmul.mubr.msk.f32.vlgmr.msra.gmra.mxu1 %vm5997_vm7, %v1101_v31  ;;  %1485 = vmatprep.subr.mxu0 %v4655_v38 }
 0x2d5   : > { %3546 = vmatprep.subr.mxu1 %v1100_v16  ;;  %1486 = vmatpush1.msra.mxu0 %v4647_v34 }
 0x2d6   : > { %3547 = vmatpush3.msra.mxu1 %v1100_v16  ;;  %3425 = vmatmul.mubr.msk.f32.vlgmr.msra.gmra.mxu0 %vm5997_vm7, %v1101_v31 }
 0x2d7   : > { %3548 = vmatprep.subr.mxu1 %v1099_v57  ;;  %1448 = vmatprep.mubr.f32.mxu1 %v4101_v7 }
 0x2d8   : > { %3549 = vmatpush3.msra.mxu1 %v1099_v57  ;;  %1525 = vmatprep.mubr.f32.mxu0 %v4101_v7 }
 0x2d9   : > { %3424 = vmatmul.mubr.msk.f32.gmra.mxu1 %vm5997_vm7, %v1102_v15  ;;  %3550 = vmatprep.subr.mxu1 %v4635_v28 }
 0x2da   : > { %3551 = vmatpush3.msra.mxu1 %v4635_v28  ;;  %3426 = vmatmul.mubr.msk.f32.gmra.mxu0 %vm5997_vm7, %v1102_v15 }
 0x2db   : > { %3552 = vmatprep.subr.mxu1 %v4649_v37  ;;  %3554 = vmatprep.mubr.msk.f32.mxu1 %vm5997_vm7, %v1101_v31 }
 0x2dc   : > { %3553 = vmatpush3.msra.mxu1 %v4649_v37  ;;  %2125 = vmatprep.subr.mxu0 %v4099_v0 }
 0x2dd   : > { %3555 = vmatmul.mubr.msk.f32.vlgmr.msra.gmra.mxu1 %vm5997_vm7, %v1102_v15  ;;  %2126 = vmatpush1.msra.mxu0 %v4099_v0 }
 0x2de   : > { %2202 = vmatprep.subr.mxu1 %v4099_v0  ;;  %2167 = vmatprep.mubr.f32.mxu0 %v4101_v7 }
 0x2df   : > { %2203 = vmatpush1.msra.mxu1 %v4099_v0  ;;  %2244 = vmatprep.mubr.f32.mxu1 %v4101_v7 }
 0x37d   : > { %v1208_v26 = vpop.f32.mrf.mxu0 }
 0x37f   : > { %v1210_v28 = vpop.f32.mrf.mxu0 }
 0x381   : > { %v1214_v32 = vpop.f32.mrf.mxu0 }
 0x383   : > { %v1216_v33 = vpop.f32.mrf.mxu0 }
 0x385   : > { %v3545_v36 = vpop.f32.mrf.mxu0 }
 0x387   : > { %v1362_v39 = vpop.f32.mrf.mxu0 }
 0x38b   : > { %v1285_v34 = vpop.f32.mrf.mxu1 }
 0x38d   : > { %v1287_v35 = vpop.f32.mrf.mxu1 }
 0x38f   : > { %v1291_v37 = vpop.f32.mrf.mxu1 }
 0x391   : > { %v1293_v38 = vpop.f32.mrf.mxu1 }
 0x394   : > { %v1444_v40 = vpop.f32.mrf.mxu1 }
 0x395   : > { %v1445_v41 = vadd.f32 %v1444_v40, %v1208_v26  ;;  %v3790_v40 = vld [vmem:[%s4359_s24] sm:$0xff] }
 0x396   : > { %v1446_v42 = vpop.f32.mrf.mxu1  ;;  %v1521_v2 = vpop.f32.mrf.mxu0 }
 0x397   : > { %3730 = vtanh.f32 %v1445_v41  ;;  %v1447_v43 = vadd.f32 %v1446_v42, %v1210_v28  ;;  %v1522_v44 = vadd.f32 %v1521_v2, %v1285_v34 }
 0x398   : > { %v1523_v6 = vpop.f32.mrf.mxu0 }
 0x399   : > { %3732 = vtanh.f32 %v1447_v43  ;;  %v1450_v45 = vpop.f32.mrf.mxu1  ;;  %v1524_v47 = vadd.f32 %v1523_v6, %v1287_v35 }
 0x39a   : > { %v1451_v5 = vadd.f32 %v1450_v45, %v1214_v32  ;;  %3734 = vtanh.f32 %v1522_v44  ;;  %v1527_v9 = vpop.f32.mrf.mxu0  ;;  %v3791_v45 = vld [vmem:[%s4359_s24 + $0x10] sm:$0xff] }
 0x39b   : > { %v1452_v10 = vpop.f32.mrf.mxu1  ;;  %v1528_v54 = vadd.f32 %v1527_v9, %v1291_v37 }
 0x39c   : > { %v1453_v46 = vadd.f32 %v1452_v10, %v1216_v33  ;;  %3736 = vtanh.f32 %v1451_v5  ;;  %v1529_v50 = vpop.f32.mrf.mxu0 }
 0x39d   : > { %v3556_v48 = vpop.f32.mrf.mxu1  ;;  %v1530_v53 = vadd.f32 %v1529_v50, %v1293_v38  ;;  %v3793_v50 = vld [vmem:[%s4366_s12 + $0x20] sm:$0xff] }
 0x39e   : > { %3738 = vtanh.f32 %v1453_v46  ;;  %v1604_v52 = vadd.f32 %v3556_v48, %v3545_v36  ;;  %v3792_v46 = vld [vmem:[%s4366_s12] sm:$0xff]  ;;  %s4108_s12 = smov [#allocation14]  }
 0x39f   : > { %v1598_v49 = vpop.f32.mrf.mxu1  ;;  %3740 = vtanh.f32 %v1524_v47 }
 0x3a0   : > { %v1599_v51 = vadd.f32 %v1598_v49, %v1362_v39 }
 0x3a2   : > { %3742 = vtanh.f32 %v1599_v51 }
 0x3a3   : > { %3744 = vtanh.f32 %v1604_v52 }
 0x3a4   : > { %v3731_v11 = vpop.eup %3730  ;;  %3746 = vtanh.f32 %v1530_v53 }
 0x3a5   : > { %1617 = vrot.lane.b32.xlu1 %v3731_v11, %s4105_s25  ;;  %3748 = vtanh.f32 %v1528_v54 }
 0x3a6   : > { %v3733_v55 = vpop.eup %3732 }
 0x3a7   : > { %1621 = vrot.lane.b32.xlu0 %v3733_v55, %s4105_s25  ;;  %v3735_v56 = vpop.eup %3734  ;;  %v3794_v55 = vld [vmem:[%s4359_s24 + $0x18] sm:$0xff] }
 0x3a9   : > { %1625 = vrot.lane.b32.xlu1 %v3735_v56, %s4105_s25  ;;  %v3737_v58 = vpop.eup %3736 }
 0x3ab   : > { %1619 = vrot.lane.b32.xlu0 %v3737_v58, %s4105_s25  ;;  %v3739_v59 = vpop.eup %3738 }
 0x3ac   : > { %v3741_v60 = vpop.eup %3740 }
 0x3ad   : > { %1623 = vrot.lane.b32.xlu1 %v3739_v59, %s4105_s25  ;;  %v3795_v59 = vld [vmem:[%s4359_s24 + $0x20] sm:$0xff]  ;;  %s3982_s24 = scalar_lea.vmem %s5893_s10, 640 }
 0x3ae   : > { %p3983_p9 = scmp.ne.s32.totalorder %s5893_s10, %s3982_s24 }
 0x3af   : > { %1629 = vrot.lane.b32.xlu0 %v3741_v60, %s4105_s25  ;;  %v3743_v61 = vpop.eup %3742 }
 0x3b0   : > { %v3745_v62 = vpop.eup %3744  ;;  %p3984_p10 = pnand %p3983_p9, %p6072_p5 }
 0x3b1   : > { %1633 = vrot.lane.b32.xlu1 %v3743_v61, %s4105_s25  ;;  %v3747_v63 = vpop.eup %3746 }
 0x3b2   : > { %v3749_v14 = vpop.eup %3748  ;;  %p3985_p1 = pneg %p3984_p10 }
 0x3b3   : > { %1635 = vrot.lane.b32.xlu0 %v3745_v62, %s4105_s25 }
 0x3b5   : > { %1631 = vrot.lane.b32.xlu1 %v3747_v63, %s4105_s25 }
 0x3b7   : > { %1627 = vrot.lane.b32.xlu0 %v3749_v14, %s4105_s25 }
 0x417   : > { %v1618_v17 = vpop.permute.xlu1 %1617 }
 0x419   : > { %v1622_v18 = vpop.permute.xlu0 %1621 }
 0x41a   : > { %v1644_v19 = vsel %vm1637_vm8, %v1618_v17, %v1622_v18 }
 0x41b   : > { %v1650_v20 = vmul.f32 1.442695, %v1644_v19  ;;  %v1626_v21 = vpop.permute.xlu1 %1625 }
 0x41c   : > { %v1642_v22 = vsel %vm1637_vm8, %v1622_v18, %v1626_v21 }
 0x41d   : > { %3750 = vpow2.f32 %v1650_v20  ;;  %v1652_v23 = vmul.f32 1.442695, %v1642_v22  ;;  %v1620_v24 = vpop.permute.xlu0 %1619 }
 0x41f   : > { %3752 = vpow2.f32 %v1652_v23  ;;  %v1624_v25 = vpop.permute.xlu1 %1623 }
 0x420   : > { %v1645_v31 = vsel %vm1637_vm8, %v1620_v24, %v1624_v25 }
 0x421   : > { %v1665_v57 = vmul.f32 1.442695, %v1645_v31  ;;  %v1630_v15 = vpop.permute.xlu0 %1629 }
 0x423   : > { %3754 = vpow2.f32 %v1665_v57  ;;  %v1634_v42 = vpop.permute.xlu1 %1633  ;;  %v4981_v57 = vshrl.u32 %v469_v12, 7 }
 0x424   : > { %v1638_v44 = vsel %vm1637_vm8, %v1630_v15, %v1634_v42 }
 0x425   : > { %v4796_v26 = vpop.permute.xlu0 %1635  ;;  %v1656_v6 = vmul.f32 1.442695, %v1638_v44 }
 0x426   : > { %v1647_v28 = vsel %vm1637_vm8, %v4796_v26, %v1620_v24 }
 0x427   : > { %v1663_v32 = vmul.f32 1.442695, %v1647_v28  ;;  %v1632_v47 = vpop.permute.xlu1 %1631 }
 0x428   : > { %v1639_v53 = vsel %vm1637_vm8, %v1632_v47, %v4796_v26 }
 0x429   : > { %v1628_v34 = vpop.permute.xlu0 %1627  ;;  %v1671_v11 = vmul.f32 1.442695, %v1639_v53 }
 0x42a   : > { %v3751_v27 = vpop.eup %3750  ;;  %v1643_v36 = vsel %vm1637_vm8, %v1624_v25, %v1628_v34  ;;  %v1641_v49 = vsel %vm1637_vm8, %v1628_v34, %v1632_v47 }
 0x42b   : > { %v4779_v29 = vmul.f32 %v3751_v27, %v4381_v1  ;;  %v1640_v1 = vsel %vm1637_vm8, %v1626_v21, %v1630_v15  ;;  %v1667_v37 = vmul.f32 1.442695, %v1643_v36  ;;  %v1669_v52 = vmul.f32 1.442695, %v1641_v49 }
 0x42c   : > { %v3753_v30 = vpop.eup %3752  ;;  %v1689_v15 = vsub.s32 2, %v4981_v57 }
 0x42d   : > { %1753 = vrot.lane.b32.xlu0 %v4779_v29, %s4106_s15  ;;  %1708 = vrot.lane.b32.xlu1 %v4779_v29, %s4104_s26  ;;  %v4788_v16 = vmul.f32 %v3753_v30, %v4391_v3  ;;  %v1654_v3 = vmul.f32 1.442695, %v1640_v1 }
 0x42f   : > { %3756 = vpow2.f32 %v1654_v3  ;;  %v4988_v3 = vld [vmem:[#allocation2] sm:$0x1f] }
 0x430   : > { %3758 = vpow2.f32 %v1663_v32  ;;  %v3755_v33 = vpop.eup %3754  ;;  %v4991_v28 = vrot.slane %v4988_v3, %v1689_v15 }
 0x431   : > { %1799 = vrot.lane.b32.xlu1 %v4779_v29, %s4103_s5  ;;  %1712 = vrot.lane.b32.xlu0 %v4788_v16, %s4104_s26  ;;  %v4818_v35 = vmul.f32 %v3755_v33, %v4394_v4  ;;  %3760 = vpow2.f32 %v1667_v37 }
 0x432   : > { %vm1701_vm9 = vcmp.eq.s32.totalorder %v4991_v28, 2  ;;  %vm1746_vm11 = vcmp.eq.s32.totalorder %v4991_v28, 35  ;;  %vm1792_vm12 = vcmp.eq.s32.totalorder %v4991_v28, 1  ;;  %vm1837_vm14 = vcmp.eq.s32.totalorder %v4991_v28, 36 }
 0x433   : > { %vm6003_vm15 = vcmp.eq.s32.totalorder %v4991_v28, 0  ;;  %vm6002_vm7 = vcmp.eq.s32.totalorder %v4991_v28, 37 }
 0x435   : > { %1844 = vrot.lane.b32.xlu1 %v4779_v29, %s4107_s19  ;;  %1803 = vrot.lane.b32.xlu0 %v4788_v16, %s4103_s5 }
 0x439   : > { %1890 = vrot.lane.b32.xlu1 %v4779_v29, %s4102_s9  ;;  %1848 = vrot.lane.b32.xlu0 %v4788_v16, %s4107_s19 }
 0x43c   : > { %v3757_v38 = vpop.eup %3756 }
 0x43d   : > { %1935 = vrot.lane.b32.xlu1 %v4779_v29, %s4105_s25  ;;  %1894 = vrot.lane.b32.xlu0 %v4788_v16, %s4102_s9  ;;  %v4831_v4 = vmul.f32 %v3757_v38, %v4425_v8  ;;  %v3759_v39 = vpop.eup %3758  ;;  %v1646_v8 = vsel %vm1637_vm8, %v1634_v42, %v1618_v17 }
 0x43e   : > { %v4838_v41 = vmul.f32 %v3790_v40, %v3759_v39  ;;  %v1648_v2 = vmul.f32 1.442695, %v1646_v8  ;;  %v3761_v43 = vpop.eup %3760 }
 0x43f   : > { %v4857_v5 = vmul.f32 %v3791_v45, %v3761_v43 }
 0x440   : > { %3762 = vpow2.f32 %v1648_v2 }
 0x441   : > { %1757 = vrot.lane.b32.xlu1 %v4788_v16, %s4106_s15  ;;  %1939 = vrot.lane.b32.xlu0 %v4788_v16, %s4105_s25  ;;  %3764 = vpow2.f32 %v1656_v6 }
 0x442   : > { %3766 = vpow2.f32 %v1669_v52 }
 0x443   : > { %3768 = vpow2.f32 %v1671_v11 }
 0x445   : > { %1755 = vrot.lane.b32.xlu1 %v4818_v35, %s4106_s15  ;;  %1710 = vrot.lane.b32.xlu0 %v4818_v35, %s4104_s26 }
 0x449   : > { %1801 = vrot.lane.b32.xlu1 %v4818_v35, %s4103_s5  ;;  %1846 = vrot.lane.b32.xlu0 %v4818_v35, %s4107_s19 }
 0x44d   : > { %1892 = vrot.lane.b32.xlu1 %v4818_v35, %s4102_s9  ;;  %1852 = vrot.lane.b32.xlu0 %v4831_v4, %s4107_s19  ;;  %v3763_v10 = vpop.eup %3762 }
 0x44e   : > { %v4876_v9 = vmul.f32 %v3792_v46, %v3763_v10  ;;  %v3765_v48 = vpop.eup %3764 }
 0x44f   : > { %v4885_v51 = vmul.f32 %v3793_v50, %v3765_v48  ;;  %v3767_v54 = vpop.eup %3766 }
 0x450   : > { %v4911_v56 = vmul.f32 %v3794_v55, %v3767_v54  ;;  %v3769_v58 = vpop.eup %3768  ;;  %v1685_v54 = vsub.s32 1, %v4981_v57 }
 0x451   : > { %1937 = vrot.lane.b32.xlu1 %v4818_v35, %s4105_s25  ;;  %1751 = vrot.lane.b32.xlu0 %v4838_v41, %s4106_s15  ;;  %v4918_v60 = vmul.f32 %v3795_v59, %v3769_v58 }
 0x452   : > { %v1686_v59 = vrot.slane %v4988_v3, %v1685_v54 }
 0x454   : > { %vm1745_vm6 = vcmp.eq.s32.totalorder %v1686_v59, 35  ;;  %vm1700_vm5 = vcmp.eq.s32.totalorder %v1686_v59, 2  ;;  %vm1791_vm2 = vcmp.eq.s32.totalorder %v1686_v59, 1  ;;  %vm1836_vm0 = vcmp.eq.s32.totalorder %v1686_v59, 36 }
 0x455   : > { %1716 = vrot.lane.b32.xlu1 %v4831_v4, %s4104_s26  ;;  %1797 = vrot.lane.b32.xlu0 %v4838_v41, %s4103_s5 }
 0x459   : > { %1807 = vrot.lane.b32.xlu1 %v4831_v4, %s4103_s5  ;;  %1933 = vrot.lane.b32.xlu0 %v4838_v41, %s4105_s25 }
 0x45d   : > { %1898 = vrot.lane.b32.xlu1 %v4831_v4, %s4102_s9  ;;  %1759 = vrot.lane.b32.xlu0 %v4857_v5, %s4106_s15 }
 0x461   : > { %1761 = vrot.lane.b32.xlu1 %v4831_v4, %s4106_s15  ;;  %1805 = vrot.lane.b32.xlu0 %v4857_v5, %s4103_s5 }
 0x465   : > { %1706 = vrot.lane.b32.xlu1 %v4838_v41, %s4104_s26  ;;  %1896 = vrot.lane.b32.xlu0 %v4857_v5, %s4102_s9 }
 0x469   : > { %1842 = vrot.lane.b32.xlu1 %v4838_v41, %s4107_s19  ;;  %1941 = vrot.lane.b32.xlu0 %v4857_v5, %s4105_s25 }
 0x46d   : > { %1888 = vrot.lane.b32.xlu1 %v4838_v41, %s4102_s9  ;;  %1704 = vrot.lane.b32.xlu0 %v4876_v9, %s4104_s26 }
 0x471   : > { %1714 = vrot.lane.b32.xlu1 %v4857_v5, %s4104_s26  ;;  %1765 = vrot.lane.b32.xlu0 %v4885_v51, %s4106_s15 }
 0x475   : > { %1850 = vrot.lane.b32.xlu1 %v4857_v5, %s4107_s19  ;;  %1840 = vrot.lane.b32.xlu0 %v4876_v9, %s4107_s19 }
 0x479   : > { %1749 = vrot.lane.b32.xlu1 %v4876_v9, %s4106_s15  ;;  %1856 = vrot.lane.b32.xlu0 %v4885_v51, %s4107_s19 }
 0x47d   : > { %1795 = vrot.lane.b32.xlu1 %v4876_v9, %s4103_s5  ;;  %1931 = vrot.lane.b32.xlu0 %v4876_v9, %s4105_s25 }
 0x481   : > { %1720 = vrot.lane.b32.xlu1 %v4885_v51, %s4104_s26  ;;  %1811 = vrot.lane.b32.xlu0 %v4885_v51, %s4103_s5 }
 0x485   : > { %1886 = vrot.lane.b32.xlu1 %v4876_v9, %s4102_s9  ;;  %1718 = vrot.lane.b32.xlu0 %v4911_v56, %s4104_s26 }
 0x489   : > { %1947 = vrot.lane.b32.xlu1 %v4885_v51, %s4105_s25  ;;  %1767 = vrot.lane.b32.xlu0 %v4918_v60, %s4106_s15 }
 0x48d   : > { %1809 = vrot.lane.b32.xlu1 %v4911_v56, %s4103_s5  ;;  %1858 = vrot.lane.b32.xlu0 %v4918_v60, %s4107_s19 }
 0x491   : > { %1900 = vrot.lane.b32.xlu1 %v4911_v56, %s4102_s9  ;;  %1722 = vrot.lane.b32.xlu0 %v4918_v60, %s4104_s26 }
 0x495   : > { %1763 = vrot.lane.b32.xlu1 %v4911_v56, %s4106_s15  ;;  %1949 = vrot.lane.b32.xlu0 %v4918_v60, %s4105_s25 }
 0x499   : > { %1943 = vrot.lane.b32.xlu1 %v4831_v4, %s4105_s25  ;;  %1813 = vrot.lane.b32.xlu0 %v4918_v60, %s4103_s5 }
 0x49d   : > { %1904 = vrot.lane.b32.xlu1 %v4918_v60, %s4102_s9  ;;  %1854 = vrot.lane.b32.xlu0 %v4911_v56, %s4107_s19 }
 0x49f   : > { %v4944_v61 = vpop.permute.xlu0 %1753  ;;  %v4946_v62 = vpop.permute.xlu1 %1708 }
 0x4a1   : > { %1945 = vrot.lane.b32.xlu1 %v4911_v56, %s4105_s25  ;;  %1902 = vrot.lane.b32.xlu0 %v4885_v51, %s4102_s9 }
 0x4a3   : > { %v4952_v63 = vpop.permute.xlu0 %1712  ;;  %v4954_v14 = vpop.permute.xlu1 %1799 }
 0x4a4   : > { %v1728_v54 = vsel %vm471_vm4, %v4946_v62, %v4952_v63 }
 0x4a7   : > { %v4956_v17 = vpop.permute.xlu0 %1803  ;;  %v4958_v18 = vpop.permute.xlu1 %1844 }
 0x4ab   : > { %v4960_v19 = vpop.permute.xlu0 %1848  ;;  %v4962_v20 = vpop.permute.xlu1 %1890 }
 0x4ac   : > { %v1865_v2 = vsel %vm1860_vm13, %v4958_v18, %v4960_v19 }
 0x4af   : > { %v4964_v21 = vpop.permute.xlu0 %1894  ;;  %v4966_v22 = vpop.permute.xlu1 %1935 }
 0x4b3   : > { %v4968_v23 = vpop.permute.xlu0 %1939  ;;  %v4970_v24 = vpop.permute.xlu1 %1757 }
 0x4b4   : > { %v1774_v38 = vsel %vm1769_vm10, %v4944_v61, %v4970_v24  ;;  %v1955_v10 = vsel %vm1637_vm8, %v4966_v22, %v4968_v23 }
 0x4b7   : > { %v4972_v25 = vpop.permute.xlu0 %1710  ;;  %v4974_v27 = vpop.permute.xlu1 %1755 }
 0x4bb   : > { %v4976_v30 = vpop.permute.xlu0 %1846  ;;  %v4978_v31 = vpop.permute.xlu1 %1801 }
 0x4bf   : > { %v4984_v1 = vpop.permute.xlu0 %1852  ;;  %v4986_v26 = vpop.permute.xlu1 %1892 }
 0x4c3   : > { %v4993_v32 = vpop.permute.xlu0 %1751  ;;  %v4995_v33 = vpop.permute.xlu1 %1937 }
 0x4c7   : > { %v4998_v34 = vpop.permute.xlu0 %1797  ;;  %v5000_v12 = vpop.permute.xlu1 %1716 }
 0x4c8   : > { %v1726_v36 = vsel %vm471_vm4, %v4952_v63, %v5000_v12 }
 0x4c9   : > { %v1736_v37 = vsel %vm1701_vm9, %v1726_v36, %v4788_v16 }
 0x4ca   : > { %v1782_v42 = vsel %vm1746_vm11, %v1774_v38, %v1736_v37  ;;  %v1777_v38 = vsel %vm1769_vm10, %v4993_v32, %v4974_v27 }
 0x4cb   : > { %v5016_v39 = vpop.permute.xlu0 %1933  ;;  %v5018_v40 = vpop.permute.xlu1 %1807 }
 0x4cc   : > { %v1817_v16 = vsel %vm502_vm3, %v4956_v17, %v5018_v40 }
 0x4cd   : > { %v1827_v8 = vsel %vm1792_vm12, %v1817_v16, %v1782_v42 }
 0x4ce   : > { %v1873_v6 = vsel %vm1837_vm14, %v1865_v2, %v1827_v8 }
 0x4cf   : > { %v5035_v43 = vpop.permute.xlu0 %1759  ;;  %v5038_v44 = vpop.permute.xlu1 %1898 }
 0x4d0   : > { %v1908_v45 = vsel %vm535_vm1, %v4964_v21, %v5038_v44 }
 0x4d1   : > { %v1918_v46 = vsel %vm6003_vm15, %v1908_v45, %v1873_v6  ;;  %vm1927_vm15 = vcmp.eq.s32.totalorder %v1686_v59, 37 }
 0x4d2   : > { %v5054_v47 = vsel %vm6002_vm7, %v1955_v10, %v1918_v46  ;;  %vm1882_vm7 = vcmp.eq.s32.totalorder %v1686_v59, 0 }
 0x4d3   : > { %v5056_v48 = vpop.permute.xlu0 %1805  ;;  %2072 = vrot.lane.b32.xlu0 %v5054_v47, %s4100_s17  ;;  %v5060_v49 = vpop.permute.xlu1 %1761 }
 0x4d4   : > { %v1820_v16 = vsel %vm502_vm3, %v4978_v31, %v5056_v48 }
 0x4d7   : > { %v5062_v50 = vpop.permute.xlu0 %1896  ;;  %2042 = vrot.lane.b32.xlu0 %v5054_v47, %s4102_s9  ;;  %v5066_v52 = vpop.permute.xlu1 %1706 }
 0x4db   : > { %v5068_v53 = vpop.permute.xlu0 %1941  ;;  %2009 = vrot.lane.b32.xlu0 %v5054_v47, %s4103_s5  ;;  %v5072_v11 = vpop.permute.xlu1 %1842 }
 0x4dc   : > { %v1868_v2 = vsel %vm1860_vm13, %v5072_v11, %v4976_v30 }
 0x4df   : > { %v5075_v55 = vpop.permute.xlu0 %1704  ;;  %1979 = vrot.lane.b32.xlu0 %v5054_v47, %s4104_s26  ;;  %v5079_v58 = vpop.permute.xlu1 %1888 }
 0x4e3   : > { %v5082_v15 = vpop.permute.xlu0 %1765  ;;  %v1715_v36 = vpop.permute.xlu1 %1714 }
 0x4e4   : > { %v1729_v37 = vsel %vm471_vm4, %v4972_v25, %v1715_v36 }
 0x4e5   : > { %v1740_v42 = vsel %vm1700_vm5, %v1729_v37, %v4818_v35  ;;  %v1911_v35 = vsel %vm535_vm1, %v4986_v26, %v5062_v50  ;;  %v1958_v37 = vsel %vm1637_vm8, %v5016_v39, %v4995_v33 }
 0x4e6   : > { %v1786_v8 = vsel %vm1745_vm6, %v1777_v38, %v1740_v42 }
 0x4e7   : > { %v1831_v6 = vsel %vm1791_vm2, %v1820_v16, %v1786_v8  ;;  %v1841_v45 = vpop.permute.xlu0 %1840  ;;  %v5103_v10 = vpop.permute.xlu1 %1850 }
 0x4e8   : > { %v1877_v46 = vsel %vm1836_vm0, %v1868_v2, %v1831_v6  ;;  %v1735_v2 = vsel %vm1700_vm5, %v1728_v54, %v4779_v29  ;;  %v1819_v6 = vsel %vm502_vm3, %v4954_v14, %v4956_v17  ;;  %v1910_v29 = vsel %vm535_vm1, %v4962_v20, %v4964_v21 }
 0x4e9   : > { %v1922_v38 = vsel %vm1882_vm7, %v1911_v35, %v1877_v46  ;;  %v1867_v46 = vsel %vm1860_vm13, %v1841_v45, %v4958_v18 }
 0x4ea   : > { %v5120_v42 = vsel %vm1927_vm15, %v1958_v37, %v1922_v38  ;;  %v1681_v38 = vsub.s32 0, %v4981_v57 }
 0x4eb   : > { %v5122_v16 = vpop.permute.xlu0 %1856  ;;  %2070 = vrot.lane.b32.xlu0 %v5120_v42, %s4100_s17  ;;  %v1750_v8 = vpop.permute.xlu1 %1749 }
 0x4ec   : > { %v1776_v63 = vsel %vm1769_vm10, %v1750_v8, %v4944_v61 }
 0x4ed   : > { %v1781_v35 = vsel %vm1745_vm6, %v1776_v63, %v1735_v2 }
 0x4ee   : > { %v1826_v37 = vsel %vm1791_vm2, %v1819_v6, %v1781_v35  ;;  %v5166_v35 = vrot.slane %v4988_v3, %v1681_v38 }
 0x4ef   : > { %v1932_v54 = vpop.permute.xlu0 %1931  ;;  %v1872_v61 = vsel %vm1836_vm0, %v1867_v46, %v1826_v37  ;;  %2040 = vrot.lane.b32.xlu0 %v5120_v42, %s4102_s9  ;;  %v5147_v17 = vpop.permute.xlu1 %1795  ;;  %v1778_v37 = vsel %vm1769_vm10, %v5082_v15, %v1750_v8 }
 0x4f0   : > { %v1917_v2 = vsel %vm1882_vm7, %v1910_v29, %v1872_v61  ;;  %v1957_v18 = vsel %vm1637_vm8, %v1932_v54, %v4966_v22  ;;  %v1730_v22 = vsel %vm471_vm4, %v5075_v55, %v4946_v62  ;;  %vm1699_vm0 = vcmp.eq.s32.totalorder %v5166_v35, 2 }
 0x4f1   : > { %v5155_v63 = vsel %vm1927_vm15, %v1957_v18, %v1917_v2  ;;  %vm1744_vm2 = vcmp.eq.s32.totalorder %v5166_v35, 35  ;;  %v1775_v62 = vsel %vm1769_vm10, %v4974_v27, %v5035_v43  ;;  %vm1790_vm5 = vcmp.eq.s32.totalorder %v5166_v35, 1 }
 0x4f2   : > { %2068 = vrot.lane.b32.xlu1 %v5155_v63, %s4100_s17  ;;  %v1821_v61 = vsel %vm502_vm3, %v5147_v17, %v4954_v14  ;;  %vm1835_vm6 = vcmp.eq.s32.totalorder %v5166_v35, 36  ;;  %vm1881_vm7 = vcmp.eq.s32.totalorder %v5166_v35, 0 }
 0x4f3   : > { %v5159_v21 = vpop.permute.xlu0 %1811  ;;  %2007 = vrot.lane.b32.xlu0 %v5120_v42, %s4103_s5  ;;  %v5163_v6 = vpop.permute.xlu1 %1720 }
 0x4f6   : > { %2038 = vrot.lane.b32.xlu1 %v5155_v63, %s4102_s9 }
 0x4f7   : > { %v5174_v59 = vpop.permute.xlu0 %1718  ;;  %1977 = vrot.lane.b32.xlu0 %v5120_v42, %s4104_s26  ;;  %v5178_v46 = vpop.permute.xlu1 %1886 }
 0x4f8   : > { %v1727_v29 = vsel %vm471_vm4, %v1715_v36, %v5174_v59  ;;  %v1734_v36 = vsel %vm1699_vm0, %v1730_v22, %v4876_v9  ;;  %v1731_v9 = vsel %vm471_vm4, %v5066_v52, %v4972_v25  ;;  %v1912_v18 = vsel %vm535_vm1, %v5178_v46, %v4962_v20 }
 0x4f9   : > { %v1741_v8 = vsel %vm1701_vm9, %v1727_v29, %v4857_v5  ;;  %v1780_v38 = vsel %vm1744_vm2, %v1778_v37, %v1734_v36  ;;  %v1869_v22 = vsel %vm1860_vm13, %v5122_v16, %v1841_v45  ;;  %vm1926_vm9 = vcmp.eq.s32.totalorder %v5166_v35, 37 }
 0x4fa   : > { %2005 = vrot.lane.b32.xlu1 %v5155_v63, %s4103_s5  ;;  %v1787_v27 = vsel %vm1746_vm11, %v1775_v62, %v1741_v8  ;;  %v1825_v5 = vsel %vm1790_vm5, %v1821_v61, %v1780_v38  ;;  %v1693_v20 = vsub.s32 3, %v4981_v57  ;;  %v1697_v29 = vsub.s32 4, %v4981_v57 }
 0x4fb   : > { %v5209_v2 = vpop.permute.xlu0 %1767  ;;  %v5211_v14 = vpop.permute.xlu1 %1947  ;;  %v1871_v45 = vsel %vm1835_vm6, %v1869_v22, %v1825_v5  ;;  %v1866_v57 = vsel %vm1860_vm13, %v4976_v30, %v5103_v10  ;;  %v1822_v5 = vsel %vm502_vm3, %v4998_v34, %v4978_v31  ;;  %v1956_v31 = vsel %vm1637_vm8, %v4995_v33, %v5068_v53 }
 0x4fc   : > { %v1779_v37 = vsel %vm1769_vm10, %v5209_v2, %v4993_v32  ;;  %v1959_v25 = vsel %vm1637_vm8, %v5211_v14, %v1932_v54  ;;  %v1739_v32 = vsel %vm1699_vm0, %v1731_v9, %v4838_v41  ;;  %v1916_v54 = vsel %vm1881_vm7, %v1912_v18, %v1871_v45 }
 0x4fd   : > { %v1785_v36 = vsel %vm1744_vm2, %v1779_v37, %v1739_v32  ;;  %v5263_v38 = vsel %vm1926_vm9, %v1959_v25, %v1916_v54  ;;  %v5280_v9 = vrot.slane %v4988_v3, %v1693_v20  ;;  %vm6034_vm11 = vcmp.eq.s32.totalorder %v4991_v28, 0 }
 0x4fe   : > { %1975 = vrot.lane.b32.xlu1 %v5155_v63, %s4104_s26  ;;  %v1830_v22 = vsel %vm1790_vm5, %v1822_v5, %v1785_v36  ;;  %v1772_v35 = vsel %vm1769_vm10, %v4970_v24, %v5060_v49  ;;  %v1770_v54 = vsel %vm1769_vm10, %v5060_v49, %v5082_v15  ;;  %v1815_v24 = vsel %vm502_vm3, %v5018_v40, %v5159_v21 }
 0x4ff   : > { %v5242_v62 = vpop.permute.xlu0 %1858  ;;  %v5244_v61 = vpop.permute.xlu1 %1809  ;;  %vm6005_vm0 = vcmp.eq.s32.totalorder %v5280_v9, 35  ;;  %vm6004_vm5 = vcmp.eq.s32.totalorder %v5280_v9, 1  ;;  %v1823_v49 = vsel %vm502_vm3, %v5159_v21, %v5147_v17  ;;  %v1863_v40 = vsel %vm1860_vm13, %v4960_v19, %v4984_v1 }
 0x500   : > { %v1818_v8 = vsel %vm502_vm3, %v5056_v48, %v5244_v61  ;;  %v1870_v48 = vsel %vm1860_vm13, %v5242_v62, %v5072_v11  ;;  %v1861_v17 = vsel %vm1860_vm13, %v4984_v1, %v5122_v16 }
 0x501   : > { %v1832_v41 = vsel %vm1792_vm12, %v1818_v8, %v1787_v27  ;;  %v5283_v27 = vrot.slane %v4988_v3, %v1697_v29  ;;  %v1876_v3 = vsel %vm1835_vm6, %v1870_v48, %v1830_v22  ;;  %vm6035_vm12 = vcmp.eq.s32.totalorder %v4991_v28, 37 }
 0x502   : > { %2064 = vrot.lane.b32.xlu1 %v5263_v38, %s4100_s17  ;;  %v1878_v30 = vsel %vm1837_vm14, %v1866_v57, %v1832_v41  ;;  %vm1702_vm14 = vcmp.eq.s32.totalorder %v5280_v9, 2  ;;  %v1724_v28 = vsel %vm471_vm4, %v5000_v12, %v5163_v6  ;;  %v1732_v29 = vsel %vm471_vm4, %v5163_v6, %v5075_v55 }
 0x503   : > { %v5285_v18 = vpop.permute.xlu0 %1722  ;;  %v5287_v11 = vpop.permute.xlu1 %1900  ;;  %vm1703_vm15 = vcmp.eq.s32.totalorder %v5283_v27, 2  ;;  %vm1748_vm2 = vcmp.eq.s32.totalorder %v5283_v27, 35  ;;  %v1737_v12 = vsel %vm1702_vm14, %v1724_v28, %v4831_v4  ;;  %vm1794_vm6 = vcmp.eq.s32.totalorder %v5283_v27, 1 }
 0x504   : > { %v1909_v37 = vsel %vm535_vm1, %v5062_v50, %v5287_v11  ;;  %v1913_v50 = vsel %vm535_vm1, %v5079_v58, %v4986_v26  ;;  %v1738_v55 = vsel %vm1703_vm15, %v1732_v29, %v4885_v51  ;;  %v1783_v8 = vsel %vm6005_vm0, %v1772_v35, %v1737_v12 }
 0x505   : > { %v1923_v25 = vsel %vm6034_vm11, %v1909_v37, %v1878_v30  ;;  %v1921_v45 = vsel %vm1881_vm7, %v1913_v50, %v1876_v3  ;;  %v1784_v4 = vsel %vm1748_vm2, %v1770_v54, %v1738_v55  ;;  %vm1838_vm7 = vcmp.eq.s32.totalorder %v5280_v9, 36 }
 0x506   : > { %v5305_v20 = vsel %vm6035_vm12, %v1956_v31, %v1923_v25  ;;  %2034 = vrot.lane.b32.xlu1 %v5263_v38, %s4102_s9  ;;  %v1828_v15 = vsel %vm6004_vm5, %v1815_v24, %v1783_v8  ;;  %v1829_v57 = vsel %vm1794_vm6, %v1823_v49, %v1784_v4  ;;  %vm1884_vm11 = vcmp.eq.s32.totalorder %v5280_v9, 0 }
 0x507   : > { %v5315_v33 = vpop.permute.xlu0 %1949  ;;  %v1764_v6 = vpop.permute.xlu1 %1763  ;;  %vm1885_vm12 = vcmp.eq.s32.totalorder %v5283_v27, 0  ;;  %vm1929_vm5 = vcmp.eq.s32.totalorder %v5280_v9, 37  ;;  %vm1930_vm0 = vcmp.eq.s32.totalorder %v5283_v27, 37  ;;  %v1874_v41 = vsel %vm1838_vm7, %v1863_v40, %v1828_v15 }
 0x508   : > { %v1960_v26 = vsel %vm1637_vm8, %v5315_v33, %v5016_v39  ;;  %v1771_v37 = vsel %vm1769_vm10, %v1764_v6, %v5209_v2 }
 0x509   : > { %v5333_v32 = vsel %vm1926_vm9, %v1960_v26, %v1921_v45  ;;  %vm1839_vm9 = vcmp.eq.s32.totalorder %v5283_v27, 36 }
 0x50a   : > { %2066 = vrot.lane.b32.xlu0 %v5333_v32, %s4100_s17  ;;  %v1875_v48 = vsel %vm1839_vm9, %v1861_v17, %v1829_v57 }
 0x50b   : > { %v1814_v39 = vpop.permute.xlu0 %1813  ;;  %v1944_v36 = vpop.permute.xlu1 %1943 }
 0x50c   : > { %v1951_v1 = vsel %vm1637_vm8, %v1944_v36, %v5211_v14  ;;  %v1953_v16 = vsel %vm1637_vm8, %v4968_v23, %v1944_v36  ;;  %v1733_v14 = vsel %vm471_vm4, %v5285_v18, %v5066_v52  ;;  %v1824_v31 = vsel %vm502_vm3, %v1814_v39, %v4998_v34 }
 0x50d   : > { %v1743_v3 = vsel %vm1703_vm15, %v1733_v14, %v4918_v60  ;;  %v1725_v52 = vsel %vm471_vm4, %v5174_v59, %v5285_v18  ;;  %v1773_v60 = vsel %vm1769_vm10, %v5035_v43, %v1764_v6  ;;  %v1816_v50 = vsel %vm502_vm3, %v5244_v61, %v1814_v39 }
 0x50e   : > { %2036 = vrot.lane.b32.xlu0 %v5333_v32, %s4102_s9  ;;  %v1789_v34 = vsel %vm1748_vm2, %v1771_v37, %v1743_v3  ;;  %v1742_v18 = vsel %vm1702_vm14, %v1725_v52, %v4911_v56  ;;  %vm6036_vm10 = vcmp.eq.s32.totalorder %v5280_v9, 35  ;;  %vm6037_vm15 = vcmp.eq.s32.totalorder %v5280_v9, 1 }
 0x50f   : > { %v1855_v51 = vpop.permute.xlu0 %1854  ;;  %v1905_v23 = vpop.permute.xlu1 %1904 }
 0x510   : > { %v1862_v25 = vsel %vm1860_vm13, %v1855_v51, %v5242_v62  ;;  %v1834_v62 = vsel %vm1794_vm6, %v1824_v31, %v1789_v34  ;;  %v1915_v59 = vsel %vm535_vm1, %v1905_v23, %v5079_v58  ;;  %v1864_v43 = vsel %vm1860_vm13, %v5103_v10, %v1855_v51 }
 0x511   : > { %v1880_v28 = vsel %vm1839_vm9, %v1862_v25, %v1834_v62  ;;  %v1788_v58 = vsel %vm6036_vm10, %v1773_v60, %v1742_v18  ;;  %vm6038_vm13 = vcmp.lt.s32.totalorder %v4493_v13, 124  ;;  %v2095_v60 = vld [vmem:[#allocation10 + $0x10] sm:$0xff] }
 0x512   : > { %v1833_v56 = vsel %vm6037_vm15, %v1816_v50, %v1788_v58  ;;  %v1925_v61 = vsel %vm1885_vm12, %v1915_v59, %v1880_v28  ;;  %vm6039_vm14 = vmmov %vm6038_vm13  ;;  %v2096_v58 = vld [vmem:[#allocation10 + $0x18] sm:$0xff] }
 0x513   : > { %v1903_v21 = vpop.permute.xlu0 %1902  ;;  %v1946_v2 = vpop.permute.xlu1 %1945  ;;  %v1879_v10 = vsel %vm1838_vm7, %v1864_v43, %v1833_v56  ;;  %vm6044_vm7 = vcmask 326656  }
 0x514   : > { %v1906_v19 = vsel %vm535_vm1, %v5038_v44, %v1903_v21  ;;  %v1914_v30 = vsel %vm535_vm1, %v1903_v21, %v5178_v46  ;;  %v1952_v29 = vsel %vm1637_vm8, %v1946_v2, %v5315_v33  ;;  %v1907_v33 = vsel %vm535_vm1, %v5287_v11, %v1905_v23  ;;  %vm6049_vm15 = vmmov %vm6044_vm7 }
 0x515   : > { %v1919_v5 = vsel %vm1884_vm11, %v1906_v19, %v1874_v41  ;;  %v1920_v22 = vsel %vm1885_vm12, %v1914_v30, %v1875_v48  ;;  %v5488_v45 = vsel %vm1930_vm0, %v1952_v29, %v1925_v61  ;;  %v1954_v26 = vsel %vm1637_vm8, %v5068_v53, %v1946_v2 }
 0x516   : > { %v5409_v44 = vsel %vm1929_vm5, %v1953_v16, %v1919_v5  ;;  %v5413_v46 = vsel %vm1930_vm0, %v1951_v1, %v1920_v22  ;;  %v1924_v12 = vsel %vm1884_vm11, %v1907_v33, %v1879_v10  ;;  %vm6040_vm0 = vmmov %vm6038_vm13 }
 0x517   : > { %2076 = vrot.lane.b32.xlu0 %v5409_v44, %s4100_s17  ;;  %2080 = vrot.lane.b32.xlu1 %v5413_v46, %s4100_s17  ;;  %v5501_v11 = vsel %vm1929_vm5, %v1954_v26, %v1924_v12  ;;  %vm6041_vm2 = vmmov %vm6040_vm0 }
 0x518   : > { %vm6042_vm5 = vmmov %vm6040_vm0 }
 0x519   : > { %vm6043_vm6 = vmmov %vm6040_vm0 }
 0x51a   : > { %vm6045_vm9 = vmmov %vm6040_vm0 }
 0x51b   : > { %2046 = vrot.lane.b32.xlu0 %v5409_v44, %s4102_s9  ;;  %2050 = vrot.lane.b32.xlu1 %v5413_v46, %s4102_s9  ;;  %vm6046_vm11 = vmmov %vm6040_vm0 }
 0x51c   : > { %vm6047_vm12 = vmmov %vm6040_vm0 }
 0x51d   : > { %vm6048_vm10 = vmmov %vm6040_vm0 }
 0x51f   : > { %2003 = vrot.lane.b32.xlu0 %v5333_v32, %s4103_s5  ;;  %2001 = vrot.lane.b32.xlu1 %v5263_v38, %s4103_s5 }
 0x523   : > { %1973 = vrot.lane.b32.xlu0 %v5333_v32, %s4104_s26  ;;  %1971 = vrot.lane.b32.xlu1 %v5263_v38, %s4104_s26 }
 0x527   : > { %2074 = vrot.lane.b32.xlu1 %v5305_v20, %s4100_s17  ;;  %2082 = vrot.lane.b32.xlu0 %v5488_v45, %s4100_s17 }
 0x52b   : > { %2044 = vrot.lane.b32.xlu1 %v5305_v20, %s4102_s9  ;;  %2048 = vrot.lane.b32.xlu0 %v5501_v11, %s4102_s9 }
 0x52f   : > { %2078 = vrot.lane.b32.xlu1 %v5501_v11, %s4100_s17  ;;  %2013 = vrot.lane.b32.xlu0 %v5409_v44, %s4103_s5  ;;  %s3986_s17 = sshll.u32 %s4108_s12, 4  ;;  %s3987_s17 = int_to_ptr.vmem [resolvable:$false] %s3986_s17 }
 0x530   : > { %p3989_p7 = scmp.lt.s32.totalorder %s5893_s10, %s3987_s17 }
 0x533   : > { %2017 = vrot.lane.b32.xlu1 %v5413_v46, %s4103_s5  ;;  %2019 = vrot.lane.b32.xlu0 %v5488_v45, %s4103_s5 }
 0x537   : > { %2052 = vrot.lane.b32.xlu1 %v5488_v45, %s4102_s9  ;;  %1985 = vrot.lane.b32.xlu0 %v5501_v11, %s4104_s26  ;;  %s3988_s9 = scalar_lea.vmem %s3987_s17, 1280 }
 0x538   : > { %p3990_p3 = scmp.lt.s32.totalorder %s3988_s9, %s3982_s24 }
 0x53a   : > { %p3991_p8 = por %p3990_p3, %p3989_p7 }
 0x53b   : > { %2011 = vrot.lane.b32.xlu1 %v5305_v20, %s4103_s5  ;;  %1983 = vrot.lane.b32.xlu0 %v5409_v44, %s4104_s26 }
 0x53c   : > { %p3992_p6 = pnand %p3991_p8, %p3985_p1 }
 0x53f   : > { %1981 = vrot.lane.b32.xlu1 %v5305_v20, %s4104_s26 }
 0x543   : > { %2015 = vrot.lane.b32.xlu1 %v5501_v11, %s4103_s5 }
 0x545   : > { %v2073_v53 = vpop.permute.xlu0 %2072 }
 0x547   : > { %1989 = vrot.lane.b32.xlu1 %v5488_v45, %s4104_s26 }
 0x549   : > { %v5531_v9 = vpop.permute.xlu0 %2042 }
 0x54b   : > { %1987 = vrot.lane.b32.xlu1 %v5413_v46, %s4104_s26 }
 0x54d   : > { %v5533_v27 = vpop.permute.xlu0 %2009 }
 0x551   : > { %v5535_v55 = vpop.permute.xlu0 %1979 }
 0x55d   : > { %v2071_v6 = vpop.permute.xlu0 %2070 }
 0x561   : > { %v2041_v54 = vpop.permute.xlu0 %2040 }
 0x564   : > { %v2069_v39 = vpop.permute.xlu1 %2068 }
 0x565   : > { %v5539_v4 = vpop.permute.xlu0 %2007  ;;  %v2088_v23 = vsel %vm6040_vm0, %v2069_v39, %v2073_v53 }
 0x568   : > { %v2039_v35 = vpop.permute.xlu1 %2038 }
 0x569   : > { %v5543_v24 = vpop.permute.xlu0 %1977  ;;  %v2058_v52 = vsel %vm535_vm1, %v2039_v35, %v5531_v9 }
 0x56c   : > { %v5537_v8 = vpop.permute.xlu1 %2005 }
 0x570   : > { %v5541_v51 = vpop.permute.xlu1 %1975 }
 0x574   : > { %v2065_v49 = vpop.permute.xlu1 %2064 }
 0x575   : > { %v2090_v14 = vsel %vm6041_vm2, %v2065_v49, %v2069_v39  ;;  %vm6054_vm2 = vcmask 392192  }
 0x578   : > { %v5545_v57 = vpop.permute.xlu1 %2034 }
 0x579   : > { %v2060_v34 = vsel %vm535_vm1, %v5545_v57, %v2039_v35 }
 0x57c   : > { %v2067_v15 = vpop.permute.xlu0 %2066 }
 0x57d   : > { %v2091_v22 = vsel %vm6039_vm14, %v2067_v15, %v2071_v6  ;;  %vm6051_vm14 = vmmov %vm6044_vm7 }
 0x580   : > { %v2037_v36 = vpop.permute.xlu0 %2036 }
 0x581   : > { %v2061_v3 = vsel %vm535_vm1, %v2037_v36, %v2041_v54 }
 0x589   : > { %v2077_v40 = vpop.permute.xlu0 %2076  ;;  %v2081_v17 = vpop.permute.xlu1 %2080 }
 0x58a   : > { %v2084_v28 = vsel %vm6045_vm9, %v2077_v40, %v2081_v17  ;;  %v2086_v59 = vsel %vm6046_vm11, %v2073_v53, %v2077_v40  ;;  %v2092_v56 = vsel %vm6048_vm10, %v2081_v17, %v2065_v49  ;;  %vm6058_vm9 = vmmov %vm6054_vm2 }
 0x58b   : > { %vm6059_vm11 = vmmov %vm6054_vm2 }
 0x58d   : > { %v2047_v21 = vpop.permute.xlu0 %2046  ;;  %v2051_v41 = vpop.permute.xlu1 %2050 }
 0x58e   : > { %v2054_v53 = vsel %vm535_vm1, %v2047_v21, %v2051_v41  ;;  %v2062_v39 = vsel %vm535_vm1, %v2051_v41, %v5545_v57 }
 0x591   : > { %v5547_v48 = vpop.permute.xlu1 %2001  ;;  %v5549_v19 = vpop.permute.xlu0 %2003 }
 0x592   : > { %v2028_v49 = vsel %vm502_vm3, %v5549_v19, %v5539_v4 }
 0x595   : > { %v5551_v30 = vpop.permute.xlu1 %1971  ;;  %v5553_v1 = vpop.permute.xlu0 %1973 }
 0x596   : > { %v1998_v40 = vsel %vm471_vm4, %v5553_v1, %v5543_v24  ;;  %v1997_v17 = vsel %vm471_vm4, %v5551_v30, %v5541_v51 }
 0x599   : > { %v2075_v16 = vpop.permute.xlu1 %2074  ;;  %v2083_v25 = vpop.permute.xlu0 %2082 }
 0x59a   : > { %v2089_v5 = vsel %vm6038_vm13, %v2071_v6, %v2075_v16  ;;  %v2093_v43 = vsel %vm6047_vm12, %v2083_v25, %v2067_v15  ;;  %vm6050_vm13 = vmmov %vm6044_vm7  ;;  %v2056_v6 = vsel %vm535_vm1, %v5531_v9, %v2047_v21  ;;  %v2025_v9 = vsel %vm502_vm3, %v5537_v8, %v5533_v27 }
 0x59b   : > { %2127 = vmatprep.subr.mxu0 %v2089_v5  ;;  %v2027_v15 = vsel %vm502_vm3, %v5547_v48, %v5537_v8  ;;  %v1995_v8 = vsel %vm471_vm4, %v5541_v51, %v5535_v55  ;;  %v2032_v5 = vld [vmem:[#allocation8 + $0x10] sm:$0xff]  ;;  %vm6060_vm12 = vcmask 195584  }
 0x59c   : > { %2128 = vmatpush1.msra.mxu0 %v2091_v22  ;;  %vm6061_vm10 = vmmov %vm6060_vm12 }
 0x59d   : > { %2129 = vmatprep.subr.mxu0 %v2088_v23  ;;  %v2045_v37 = vpop.permute.xlu1 %2044  ;;  %v2049_v18 = vpop.permute.xlu0 %2048 }
 0x59e   : > { %2130 = vmatpush1.msra.mxu0 %v2090_v14  ;;  %v2059_v31 = vsel %vm535_vm1, %v2041_v54, %v2045_v37  ;;  %v2057_v26 = vsel %vm535_vm1, %v2045_v37, %v2049_v18 }
 0x59f   : > { %2131 = vmatprep.subr.mxu0 %v2059_v31 }
 0x5a0   : > { %2132 = vmatpush1.msra.mxu0 %v2061_v3 }
 0x5a1   : > { %2133 = vmatprep.subr.mxu0 %v2058_v52  ;;  %v2079_v2 = vpop.permute.xlu1 %2078  ;;  %v2014_v12 = vpop.permute.xlu0 %2013  ;;  %v2033_v52 = vld [vmem:[#allocation8 + $0x18] sm:$0xff] }
 0x5a2   : > { %v2087_v62 = vsel %vm6042_vm5, %v2075_v16, %v2079_v2  ;;  %2134 = vmatpush1.msra.mxu0 %v2060_v34  ;;  %v2085_v50 = vsel %vm6043_vm6, %v2079_v2, %v2083_v25  ;;  %v2023_v22 = vsel %vm502_vm3, %v5533_v27, %v2014_v12  ;;  %vm6055_vm5 = vmmov %vm6054_vm2 }
 0x5a3   : > { %2204 = vmatprep.subr.mxu1 %v2085_v50  ;;  %3557 = vmatprep.subr.mxu0 %v4099_v0  ;;  %vm6056_vm6 = vmmov %vm6054_vm2 }
 0x5a4   : > { %3429 = vmatmul.mubr.msk.f32.vlgmr.msra.gmra.mxu0 %vm6044_vm7, %v2095_v60  ;;  %2205 = vmatpush1.msra.mxu1 %v2087_v62 }
 0x5a5   : > { %3558 = vmatpush3.msra.mxu0 %v4099_v0  ;;  %2206 = vmatprep.subr.mxu1 %v2084_v28  ;;  %v5586_v29 = vpop.permute.xlu1 %2017  ;;  %v2020_v57 = vpop.permute.xlu0 %2019 }
 0x5a6   : > { %3559 = vmatprep.subr.mxu0 %v2093_v43  ;;  %2207 = vmatpush1.msra.mxu1 %v2086_v59  ;;  %v2021_v51 = vsel %vm502_vm3, %v2014_v12, %v5586_v29  ;;  %v2030_v27 = vsel %vm502_vm3, %v2020_v57, %v5549_v19  ;;  %v2029_v3 = vsel %vm502_vm3, %v5586_v29, %v5547_v48 }
 0x5a7   : > { %3560 = vmatpush3.msra.mxu0 %v2093_v43  ;;  %2173 = vmatprep.mubr.f32.mxu0 %v4101_v7 }
 0x5a8   : > { %3561 = vmatprep.subr.mxu0 %v2092_v56  ;;  %3430 = vmatmul.mubr.msk.f32.gmra.mxu0 %vm6049_vm15, %v2096_v58  ;;  %vm6062_vm15 = vmmov %vm6061_vm10 }
 0x5a9   : > { %3562 = vmatpush3.msra.mxu0 %v2092_v56  ;;  %v2053_v61 = vpop.permute.xlu1 %2052  ;;  %3567 = vmatprep.mubr.msk.f32.mxu0 %vm6050_vm13, %v2095_v60  ;;  %v1986_v16 = vpop.permute.xlu0 %1985  ;;  %vm6063_vm13 = vmmov %vm6061_vm10 }
 0x5aa   : > { %v2055_v10 = vsel %vm535_vm1, %v2049_v18, %v2053_v61  ;;  %v2063_v33 = vsel %vm535_vm1, %v2053_v61, %v2037_v36  ;;  %vm6052_vm1 = vmmov %vm6044_vm7 }
 0x5ab   : > { %2208 = vmatprep.subr.mxu1 %v2055_v10  ;;  %3563 = vmatprep.subr.mxu0 %v2063_v33  ;;  %vm6053_vm0 = vmmov %vm6052_vm1 }
 0x5ac   : > { %2209 = vmatpush1.msra.mxu1 %v2057_v26  ;;  %3564 = vmatpush3.msra.mxu0 %v2063_v33  ;;  %vm6057_vm7 = vmmov %vm6054_vm2 }
 0x5ad   : > { %2210 = vmatprep.subr.mxu1 %v2054_v53  ;;  %3565 = vmatprep.subr.mxu0 %v2062_v39  ;;  %v2012_v35 = vpop.permute.xlu1 %2011  ;;  %v1984_v31 = vpop.permute.xlu0 %1983 }
 0x5ae   : > { %2211 = vmatpush1.msra.mxu1 %v2056_v6  ;;  %3566 = vmatpush3.msra.mxu0 %v2062_v39  ;;  %v2026_v54 = vsel %vm502_vm3, %v5539_v4, %v2012_v35  ;;  %v1993_v2 = vsel %vm471_vm4, %v5535_v55, %v1984_v31 }
 0x5af   : > { %3431 = vmatmul.mubr.msk.f32.vlgmr.msra.gmra.mxu1 %vm6051_vm14, %v2095_v60  ;;  %2358 = vmatprep.subr.mxu1 %v2026_v54  ;;  %vm6064_vm14 = vmmov %vm6061_vm10 }
 0x5b0   : > { %2359 = vmatpush1.msra.mxu1 %v2028_v49  ;;  %2250 = vmatprep.mubr.f32.mxu1 %v4101_v7 }
 0x5b1   : > { %2360 = vmatprep.subr.mxu1 %v2025_v9  ;;  %v1982_v36 = vpop.permute.xlu1 %1981  ;;  %3568 = vmatmul.mubr.msk.f32.vlgmr.msra.gmra.mxu0 %vm6052_vm1, %v2096_v58  ;;  %vm6066_vm1 = vcmask 261120  }
 0x5b2   : > { %2361 = vmatpush1.msra.mxu1 %v2027_v15  ;;  %v1996_v4 = vsel %vm471_vm4, %v5543_v24, %v1982_v36  ;;  %2479 = vmatprep.mubr.f32.mxu0 %v4101_v7  ;;  %v1994_v37 = vsel %vm471_vm4, %v1982_v36, %v1986_v16 }
 0x5b3   : > { %2362 = vmatprep.subr.mxu1 %v1996_v4  ;;  %3432 = vmatmul.mubr.msk.f32.gmra.mxu1 %vm6053_vm0, %v2096_v58  ;;  %vm6067_vm0 = vmmov %vm6066_vm1 }
 0x5b4   : > { %2363 = vmatpush1.msra.mxu1 %v1998_v40  ;;  %2402 = vmatprep.mubr.f32.mxu1 %v4101_v7 }
 0x5b5   : > { %2364 = vmatprep.subr.mxu1 %v1995_v8  ;;  %v2016_v21 = vpop.permute.xlu1 %2015 }
 0x5b6   : > { %v2024_v24 = vsel %vm502_vm3, %v2012_v35, %v2016_v21  ;;  %2365 = vmatpush1.msra.mxu1 %v1997_v17  ;;  %v2022_v41 = vsel %vm502_vm3, %v2016_v21, %v2020_v57 }
 0x5b7   : > { %2366 = vmatprep.subr.mxu1 %v5120_v42  ;;  %2435 = vmatprep.subr.mxu0 %v2022_v41 }
 0x5b8   : > { %2367 = vmatpush1.msra.mxu1 %v5333_v32  ;;  %2436 = vmatpush1.msra.mxu0 %v2024_v24 }
 0x5b9   : > { %2368 = vmatprep.subr.mxu1 %v5155_v63  ;;  %2437 = vmatprep.subr.mxu0 %v2021_v51  ;;  %v1990_v23 = vpop.permute.xlu1 %1989 }
 0x5ba   : > { %2369 = vmatpush1.msra.mxu1 %v5263_v38  ;;  %2438 = vmatpush1.msra.mxu0 %v2023_v22  ;;  %v1992_v14 = vsel %vm471_vm4, %v1986_v16, %v1990_v23  ;;  %v2000_v19 = vsel %vm471_vm4, %v1990_v23, %v5553_v1 }
 0x5bb   : > { %3435 = vmatmul.mubr.msk.f32.vlgmr.msra.gmra.mxu1 %vm6054_vm2, %v2032_v5  ;;  %2439 = vmatprep.subr.mxu0 %v1992_v14  ;;  %vm6068_vm2 = vmmov %vm6067_vm0 }
 0x5bc   : > { %3570 = vmatprep.subr.mxu1 %v2030_v27  ;;  %2440 = vmatpush1.msra.mxu0 %v1994_v37 }
 0x5bd   : > { %3571 = vmatpush3.msra.mxu1 %v2030_v27  ;;  %v1988_v25 = vpop.permute.xlu1 %1987  ;;  %2408 = vmatprep.mubr.f32.mxu1 %v4101_v7 }
 0x5be   : > { %3572 = vmatprep.subr.mxu1 %v2029_v3  ;;  %v1991_v34 = vsel %vm471_vm4, %v1984_v31, %v1988_v25  ;;  %v1999_v48 = vsel %vm471_vm4, %v1988_v25, %v5551_v30 }
 0x5bf   : > { %3573 = vmatpush3.msra.mxu1 %v2029_v3  ;;  %2441 = vmatprep.subr.mxu0 %v1991_v34 }
 0x5c0   : > { %3436 = vmatmul.mubr.msk.f32.gmra.mxu1 %vm6055_vm5, %v2033_v52  ;;  %3574 = vmatprep.subr.mxu1 %v2000_v19  ;;  %vm6070_vm5 = vmmov %vm6067_vm0 }
 0x5c1   : > { %2442 = vmatpush1.msra.mxu0 %v1993_v2  ;;  %3575 = vmatpush3.msra.mxu1 %v2000_v19 }
 0x5c2   : > { %2443 = vmatprep.subr.mxu0 %v5501_v11  ;;  %3576 = vmatprep.subr.mxu1 %v1999_v48 }
 0x5c3   : > { %2444 = vmatpush1.msra.mxu0 %v5305_v20  ;;  %3577 = vmatpush3.msra.mxu1 %v1999_v48 }
 0x5c4   : > { %2445 = vmatprep.subr.mxu0 %v5409_v44  ;;  %3578 = vmatprep.subr.mxu1 %v5488_v45 }
 0x5c5   : > { %2446 = vmatpush1.msra.mxu0 %v5054_v47  ;;  %3579 = vmatpush3.msra.mxu1 %v5488_v45 }
 0x5c6   : > { %3437 = vmatmul.mubr.msk.f32.vlgmr.msra.gmra.mxu0 %vm6056_vm6, %v2032_v5  ;;  %3580 = vmatprep.subr.mxu1 %v5413_v46  ;;  %vm6071_vm6 = vmmov %vm6067_vm0 }
 0x5c7   : > { %3581 = vmatpush3.msra.mxu1 %v5413_v46  ;;  %3582 = vmatprep.mubr.msk.f32.mxu1 %vm6057_vm7, %v2032_v5 }
 0x5c8   : > { %3583 = vmatmul.mubr.msk.f32.vlgmr.msra.gmra.mxu1 %vm6058_vm9, %v2033_v52  ;;  %2485 = vmatprep.mubr.f32.mxu0 %v4101_v7 }
 0x5c9   : > { %2685 = vmatprep.subr.mxu0 %v4099_v0  ;;  %2762 = vmatprep.subr.mxu1 %v4099_v0 }
 0x5ca   : > { %3438 = vmatmul.mubr.msk.f32.gmra.mxu0 %vm6059_vm11, %v2033_v52  ;;  %2763 = vmatpush1.msra.mxu1 %v4099_v0 }
 0x5cb   : > { %2686 = vmatpush1.msra.mxu0 %v4099_v0  ;;  %2723 = vmatprep.mubr.f32.mxu0 %v4101_v7 }
 0x5cc   : > { %2800 = vmatprep.mubr.f32.mxu1 %v4101_v7 }
 0x664   : > { %v2169_v30 = vpop.f32.mrf.mxu0 }
 0x666   : > { %v2171_v60 = vpop.f32.mrf.mxu0 }
 0x668   : > { %v2175_v50 = vpop.f32.mrf.mxu0 }
 0x66a   : > { %v2177_v59 = vpop.f32.mrf.mxu0 }
 0x66f   : > { %v2246_v55 = vpop.f32.mrf.mxu1 }
 0x671   : > { %v2248_v1 = vpop.f32.mrf.mxu1  ;;  %v3569_v61 = vpop.f32.mrf.mxu0 }
 0x673   : > { %v2252_v62 = vpop.f32.mrf.mxu1  ;;  %v2323_v39 = vpop.f32.mrf.mxu0 }
 0x675   : > { %v2254_v28 = vpop.f32.mrf.mxu1 }
 0x67b   : > { %v2404_v18 = vpop.f32.mrf.mxu1 }
 0x67c   : > { %v2405_v43 = vadd.f32 %v2404_v18, %v2169_v30 }
 0x67d   : > { %v2406_v29 = vpop.f32.mrf.mxu1 }
 0x67e   : > { %v2567_v58 = vmul.f32 0.01, %v2405_v43  ;;  %v2407_v56 = vadd.f32 %v2406_v29, %v2171_v60 }
 0x680   : > { %v5701_v10 = vmax.f32 %v2405_v43, %v2567_v58  ;;  %v2568_v33 = vmul.f32 0.01, %v2407_v56  ;;  %v2410_v26 = vpop.f32.mrf.mxu1 }
 0x681   : > { %v2411_v12 = vadd.f32 %v2410_v26, %v2175_v50 }
 0x682   : > { %v2412_v53 = vpop.f32.mrf.mxu1  ;;  %2620 = vrot.lane.b32.xlu1 %v5701_v10, %s4103_s5  ;;  %v5705_v35 = vmax.f32 %v2407_v56, %v2568_v33 }
 0x683   : > { %v2572_v6 = vmul.f32 0.01, %v2411_v12  ;;  %v2413_v54 = vadd.f32 %v2412_v53, %v2177_v59 }
 0x685   : > { %v5707_v49 = vmax.f32 %v2411_v12, %v2572_v6  ;;  %v2573_v15 = vmul.f32 0.01, %v2413_v54 }
 0x686   : > { %v2481_v9 = vpop.f32.mrf.mxu0  ;;  %2624 = vrot.lane.b32.xlu1 %v5705_v35, %s4103_s5 }
 0x687   : > { %2622 = vrot.lane.b32.xlu0 %v5707_v49, %s4103_s5  ;;  %v5717_v24 = vmax.f32 %v2413_v54, %v2573_v15  ;;  %v2482_v41 = vadd.f32 %v2481_v9, %v2246_v55 }
 0x688   : > { %v2483_v57 = vpop.f32.mrf.mxu0  ;;  %v3584_v36 = vpop.f32.mrf.mxu1 }
 0x689   : > { %v2564_v4 = vadd.f32 %v3584_v36, %v3569_v61  ;;  %v2569_v22 = vmul.f32 0.01, %v2482_v41  ;;  %v2484_v23 = vadd.f32 %v2483_v57, %v2248_v1  ;;  %v2651_v61 = vld [vmem:[#allocation13 + $0x10] sm:$0xff] }
 0x68a   : > { %v2487_v40 = vpop.f32.mrf.mxu0  ;;  %v2558_v8 = vpop.f32.mrf.mxu1  ;;  %2591 = vrot.lane.b32.xlu1 %v5705_v35, %s4104_s26 }
 0x68b   : > { %v2576_v17 = vmul.f32 0.01, %v2564_v4  ;;  %v2488_v21 = vadd.f32 %v2487_v40, %v2252_v62  ;;  %2589 = vrot.lane.b32.xlu0 %v5707_v49, %s4104_s26  ;;  %v2559_v5 = vadd.f32 %v2558_v8, %v2323_v39  ;;  %v5731_v31 = vmax.f32 %v2482_v41, %v2569_v22  ;;  %v2652_v39 = vld [vmem:[#allocation13 + $0x18] sm:$0xff] }
 0x68c   : > { %v2489_v27 = vpop.f32.mrf.mxu0  ;;  %v2570_v3 = vmul.f32 0.01, %v2484_v23 }
 0x68d   : > { %v5719_v16 = vmax.f32 %v2564_v4, %v2576_v17  ;;  %v2574_v51 = vmul.f32 0.01, %v2488_v21  ;;  %v2571_v37 = vmul.f32 0.01, %v2559_v5  ;;  %v2490_v52 = vadd.f32 %v2489_v27, %v2254_v28 }
 0x68e   : > { %v5739_v34 = vmax.f32 %v2484_v23, %v2570_v3  ;;  %v2618_v23 = vld [vmem:[#allocation11 + $0x10] sm:$0xff] }
 0x68f   : > { %2626 = vrot.lane.b32.xlu0 %v5717_v24, %s4103_s5  ;;  %2638 = vrot.lane.b32.xlu1 %v5719_v16, %s4103_s5  ;;  %v5725_v14 = vmax.f32 %v2488_v21, %v2574_v51  ;;  %v5733_v25 = vmax.f32 %v2559_v5, %v2571_v37  ;;  %v2575_v19 = vmul.f32 0.01, %v2490_v52 }
 0x691   : > { %v5745_v2 = vmax.f32 %v2490_v52, %v2575_v19 }
 0x693   : > { %2593 = vrot.lane.b32.xlu0 %v5717_v24, %s4104_s26  ;;  %2630 = vrot.lane.b32.xlu1 %v5725_v14, %s4103_s5 }
 0x697   : > { %2636 = vrot.lane.b32.xlu1 %v5733_v25, %s4103_s5  ;;  %2628 = vrot.lane.b32.xlu0 %v5731_v31, %s4103_s5 }
 0x69b   : > { %2597 = vrot.lane.b32.xlu1 %v5725_v14, %s4104_s26  ;;  %2632 = vrot.lane.b32.xlu0 %v5739_v34, %s4103_s5 }
 0x69f   : > { %2587 = vrot.lane.b32.xlu1 %v5701_v10, %s4104_s26  ;;  %2634 = vrot.lane.b32.xlu0 %v5745_v2, %s4103_s5 }
 0x6a3   : > { %2605 = vrot.lane.b32.xlu1 %v5719_v16, %s4104_s26  ;;  %2595 = vrot.lane.b32.xlu0 %v5731_v31, %s4104_s26 }
 0x6a7   : > { %2603 = vrot.lane.b32.xlu1 %v5733_v25, %s4104_s26  ;;  %2601 = vrot.lane.b32.xlu0 %v5745_v2, %s4104_s26 }
 0x6ab   : > { %2599 = vrot.lane.b32.xlu0 %v5739_v34, %s4104_s26 }
 0x6f4   : > { %v2621_v48 = vpop.permute.xlu1 %2620 }
 0x6f8   : > { %v2625_v55 = vpop.permute.xlu1 %2624 }
 0x6f9   : > { %v2623_v30 = vpop.permute.xlu0 %2622  ;;  %v2646_v33 = vsel %vm502_vm3, %v2621_v48, %v2625_v55 }
 0x6fc   : > { %v2592_v1 = vpop.permute.xlu1 %2591 }
 0x6fd   : > { %v5761_v60 = vpop.permute.xlu0 %2589 }
 0x701   : > { %v2627_v62 = vpop.permute.xlu0 %2626  ;;  %v2639_v50 = vpop.permute.xlu1 %2638 }
 0x702   : > { %v2647_v43 = vsel %vm502_vm3, %v2623_v30, %v2627_v62  ;;  %v2649_v53 = vsel %vm502_vm3, %v2639_v50, %v2623_v30 }
 0x705   : > { %v2594_v28 = vpop.permute.xlu0 %2593  ;;  %v2631_v59 = vpop.permute.xlu1 %2630 }
 0x706   : > { %v2645_v18 = vsel %vm502_vm3, %v2627_v62, %v2631_v59  ;;  %v2614_v8 = vsel %vm471_vm4, %v5761_v60, %v2594_v28 }
 0x707   : > { %2687 = vmatprep.subr.mxu0 %v2645_v18 }
 0x708   : > { %2688 = vmatpush1.msra.mxu0 %v2647_v43 }
 0x709   : > { %v2629_v29 = vpop.permute.xlu0 %2628  ;;  %v2637_v58 = vpop.permute.xlu1 %2636 }
 0x70a   : > { %v2644_v56 = vsel %vm502_vm3, %v2625_v55, %v2629_v29  ;;  %v2648_v6 = vsel %vm502_vm3, %v2637_v58, %v2621_v48 }
 0x70b   : > { %2689 = vmatprep.subr.mxu0 %v2644_v56 }
 0x70c   : > { %2690 = vmatpush1.msra.mxu0 %v2646_v33 }
 0x70d   : > { %v2633_v26 = vpop.permute.xlu0 %2632  ;;  %3585 = vmatprep.subr.mxu0 %v4099_v0  ;;  %v2598_v12 = vpop.permute.xlu1 %2597  ;;  %3441 = vmatmul.mubr.msk.f32.vlgmr.msra.gmra.mxu0 %vm6060_vm12, %v2651_v61 }
 0x70e   : > { %3586 = vmatpush3.msra.mxu0 %v4099_v0  ;;  %2729 = vmatprep.mubr.f32.mxu0 %v4101_v7  ;;  %v2640_v57 = vsel %vm502_vm3, %v2633_v26, %v2637_v58  ;;  %v2642_v36 = vsel %vm502_vm3, %v2629_v29, %v2633_v26  ;;  %v2612_v40 = vsel %vm471_vm4, %v2594_v28, %v2598_v12 }
 0x70f   : > { %3587 = vmatprep.subr.mxu0 %v2649_v53 }
 0x710   : > { %3588 = vmatpush3.msra.mxu0 %v2649_v53 }
 0x711   : > { %v2635_v54 = vpop.permute.xlu0 %2634  ;;  %3589 = vmatprep.subr.mxu0 %v2648_v6  ;;  %v2588_v9 = vpop.permute.xlu1 %2587  ;;  %3442 = vmatmul.mubr.msk.f32.gmra.mxu0 %vm6061_vm10, %v2652_v39 }
 0x712   : > { %v2643_v15 = vsel %vm502_vm3, %v2631_v59, %v2635_v54  ;;  %3590 = vmatpush3.msra.mxu0 %v2648_v6  ;;  %v2641_v0 = vsel %vm502_vm3, %v2635_v54, %v2639_v50  ;;  %3591 = vmatprep.mubr.msk.f32.mxu0 %vm6062_vm15, %v2651_v61  ;;  %v2613_v41 = vsel %vm471_vm4, %v2588_v9, %v2592_v1  ;;  %vm6065_vm3 = vmmov %vm6061_vm10 }
 0x713   : > { %2764 = vmatprep.subr.mxu1 %v2641_v0 }
 0x714   : > { %2765 = vmatpush1.msra.mxu1 %v2643_v15 }
 0x715   : > { %v2596_v4 = vpop.permute.xlu0 %2595  ;;  %2766 = vmatprep.subr.mxu1 %v2640_v57  ;;  %3592 = vmatmul.mubr.msk.f32.vlgmr.msra.gmra.mxu0 %vm6063_vm13, %v2652_v39  ;;  %v2606_v17 = vpop.permute.xlu1 %2605 }
 0x716   : > { %2767 = vmatpush1.msra.mxu1 %v2642_v36  ;;  %3035 = vmatprep.mubr.f32.mxu0 %v4101_v7  ;;  %v2611_v21 = vsel %vm471_vm4, %v2592_v1, %v2596_v4 }
 0x717   : > { %3443 = vmatmul.mubr.msk.f32.vlgmr.msra.gmra.mxu1 %vm6064_vm14, %v2651_v61  ;;  %2918 = vmatprep.subr.mxu1 %v2612_v40 }
 0x718   : > { %2919 = vmatpush1.msra.mxu1 %v2614_v8  ;;  %2806 = vmatprep.mubr.f32.mxu1 %v4101_v7 }
 0x719   : > { %v2602_v51 = vpop.permute.xlu0 %2601  ;;  %2920 = vmatprep.subr.mxu1 %v2611_v21  ;;  %v2604_v37 = vpop.permute.xlu1 %2603 }
 0x71a   : > { %v2610_v5 = vsel %vm471_vm4, %v2598_v12, %v2602_v51  ;;  %2921 = vmatpush1.msra.mxu1 %v2613_v41  ;;  %v2608_v22 = vsel %vm471_vm4, %v2602_v51, %v2606_v17 }
 0x71b   : > { %3444 = vmatmul.mubr.msk.f32.gmra.mxu1 %vm6065_vm3, %v2652_v39  ;;  %2922 = vmatprep.subr.mxu1 %v5717_v24 }
 0x71c   : > { %2995 = vmatprep.subr.mxu0 %v2608_v22  ;;  %2923 = vmatpush1.msra.mxu1 %v5707_v49  ;;  %v2616_v49 = vsel %vm471_vm4, %v2606_v17, %v5761_v60 }
 0x71d   : > { %2996 = vmatpush1.msra.mxu0 %v2610_v5  ;;  %v2600_v27 = vpop.permute.xlu0 %2599  ;;  %2924 = vmatprep.subr.mxu1 %v5705_v35  ;;  %v2619_v35 = vld [vmem:[#allocation11 + $0x18] sm:$0xff] }
 0x71e   : > { %v2609_v3 = vsel %vm471_vm4, %v2596_v4, %v2600_v27  ;;  %2925 = vmatpush1.msra.mxu1 %v5701_v10  ;;  %2958 = vmatprep.mubr.f32.mxu1 %v4101_v7  ;;  %v2607_v52 = vsel %vm471_vm4, %v2600_v27, %v2604_v37  ;;  %v2615_v10 = vsel %vm471_vm4, %v2604_v37, %v2588_v9  ;;  %vm6069_vm4 = vmmov %vm6067_vm0 }
 0x71f   : > { %3447 = vmatmul.mubr.msk.f32.vlgmr.msra.gmra.mxu1 %vm6066_vm1, %v2618_v23  ;;  %2997 = vmatprep.subr.mxu0 %v2607_v52 }
 0x720   : > { %3594 = vmatprep.subr.mxu1 %v2616_v49  ;;  %2998 = vmatpush1.msra.mxu0 %v2609_v3 }
 0x721   : > { %3595 = vmatpush3.msra.mxu1 %v2616_v49  ;;  %2999 = vmatprep.subr.mxu0 %v5745_v2 }
 0x722   : > { %3596 = vmatprep.subr.mxu1 %v2615_v10  ;;  %2964 = vmatprep.mubr.f32.mxu1 %v4101_v7 }
 0x723   : > { %3000 = vmatpush1.msra.mxu0 %v5725_v14  ;;  %3597 = vmatpush3.msra.mxu1 %v2615_v10 }
 0x724   : > { %3448 = vmatmul.mubr.msk.f32.gmra.mxu1 %vm6067_vm0, %v2619_v35  ;;  %3001 = vmatprep.subr.mxu0 %v5739_v34 }
 0x725   : > { %3598 = vmatprep.subr.mxu1 %v5719_v16  ;;  %3002 = vmatpush1.msra.mxu0 %v5731_v31 }
 0x726   : > { %3599 = vmatpush3.msra.mxu1 %v5719_v16  ;;  %3449 = vmatmul.mubr.msk.f32.vlgmr.msra.gmra.mxu0 %vm6068_vm2, %v2618_v23 }
 0x727   : > { %3600 = vmatprep.subr.mxu1 %v5733_v25  ;;  %3602 = vmatprep.mubr.msk.f32.mxu1 %vm6069_vm4, %v2618_v23 }
 0x728   : > { %3601 = vmatpush3.msra.mxu1 %v5733_v25  ;;  %3041 = vmatprep.mubr.f32.mxu0 %v4101_v7 }
 0x729   : > { %3603 = vmatmul.mubr.msk.f32.vlgmr.msra.gmra.mxu1 %vm6070_vm5, %v2619_v35 }
 0x72a   : > { %3450 = vmatmul.mubr.msk.f32.gmra.mxu0 %vm6071_vm6, %v2619_v35 }
 0x7cd   : > { %v2725_v24 = vpop.f32.mrf.mxu0 }
 0x7cf   : > { %v2727_v14 = vpop.f32.mrf.mxu0 }
 0x7d1   : > { %v2731_v31 = vpop.f32.mrf.mxu0 }
 0x7d3   : > { %v2733_v2 = vpop.f32.mrf.mxu0 }
 0x7d5   : > { %v3593_v30 = vpop.f32.mrf.mxu0 }
 0x7d7   : > { %v2802_v34 = vpop.f32.mrf.mxu1  ;;  %v2879_v62 = vpop.f32.mrf.mxu0 }
 0x7d9   : > { %v2804_v19 = vpop.f32.mrf.mxu1 }
 0x7db   : > { %v2808_v16 = vpop.f32.mrf.mxu1 }
 0x7dd   : > { %v2810_v48 = vpop.f32.mrf.mxu1 }
 0x7df   : > { %v2960_v55 = vpop.f32.mrf.mxu1 }
 0x7e0   : > { %v2961_v1 = vadd.f32 %v2960_v55, %v2725_v24 }
 0x7e1   : > { %v2962_v60 = vpop.f32.mrf.mxu1 }
 0x7e2   : > { %3770 = vtanh.f32 %v2961_v1  ;;  %v2963_v25 = vadd.f32 %v2962_v60, %v2727_v14 }
 0x7e4   : > { %v2966_v7 = vpop.f32.mrf.mxu1  ;;  %3772 = vtanh.f32 %v2963_v25 }
 0x7e5   : > { %v2967_v50 = vadd.f32 %v2966_v7, %v2731_v31 }
 0x7e6   : > { %v2968_v28 = vpop.f32.mrf.mxu1  ;;  %v3037_v59 = vpop.f32.mrf.mxu0 }
 0x7e7   : > { %3774 = vtanh.f32 %v2967_v50  ;;  %v2969_v18 = vadd.f32 %v2968_v28, %v2733_v2  ;;  %v3038_v43 = vadd.f32 %v3037_v59, %v2802_v34 }
 0x7e8   : > { %v3039_v29 = vpop.f32.mrf.mxu0 }
 0x7e9   : > { %v3604_v58 = vpop.f32.mrf.mxu1  ;;  %3776 = vtanh.f32 %v3038_v43  ;;  %v3040_v56 = vadd.f32 %v3039_v29, %v2804_v19 }
 0x7ea   : > { %v3043_v61 = vpop.f32.mrf.mxu0  ;;  %3778 = vtanh.f32 %v2969_v18  ;;  %v3120_v9 = vadd.f32 %v3604_v58, %v3593_v30 }
 0x7eb   : > { %v3044_v33 = vadd.f32 %v3043_v61, %v2808_v16  ;;  %v3114_v26 = vpop.f32.mrf.mxu1  ;;  %3780 = vtanh.f32 %v3040_v56 }
 0x7ec   : > { %v3045_v12 = vpop.f32.mrf.mxu0  ;;  %v3115_v53 = vadd.f32 %v3114_v26, %v2879_v62 }
 0x7ed   : > { %3782 = vtanh.f32 %v3044_v33  ;;  %v3046_v6 = vadd.f32 %v3045_v12, %v2810_v48 }
 0x7ee   : > { %3784 = vtanh.f32 %v3115_v53 }
 0x7ef   : > { %v3771_v39 = vpop.eup %3770  ;;  %3786 = vtanh.f32 %v3046_v6 }
 0x7f0   : > { %3133 = vrot.lane.b32.xlu0 %v3771_v39, %s4105_s25  ;;  %3788 = vtanh.f32 %v3120_v9 }
 0x7f1   : > { %v3773_v54 = vpop.eup %3772 }
 0x7f4   : > { %v3775_v15 = vpop.eup %3774  ;;  %3137 = vrot.lane.b32.xlu0 %v3773_v54, %s4105_s25 }
 0x7f5   : > { %3135 = vrot.lane.b32.xlu1 %v3775_v15, %s4105_s25 }
 0x7f6   : > { %v3777_v0 = vpop.eup %3776 }
 0x7f7   : > { %v3779_v57 = vpop.eup %3778 }
 0x7f8   : > { %3141 = vrot.lane.b32.xlu0 %v3777_v0, %s4105_s25  ;;  %v3781_v36 = vpop.eup %3780 }
 0x7f9   : > { %3139 = vrot.lane.b32.xlu1 %v3779_v57, %s4105_s25 }
 0x7fa   : > { %v3783_v4 = vpop.eup %3782 }
 0x7fb   : > { %v3785_v40 = vpop.eup %3784 }
 0x7fc   : > { %3145 = vrot.lane.b32.xlu0 %v3781_v36, %s4105_s25  ;;  %v3787_v8 = vpop.eup %3786 }
 0x7fd   : > { %3143 = vrot.lane.b32.xlu1 %v3783_v4, %s4105_s25  ;;  %v3789_v17 = vpop.eup %3788 }
 0x800   : > { %3149 = vrot.lane.b32.xlu0 %v3785_v40, %s4105_s25 }
 0x801   : > { %3147 = vrot.lane.b32.xlu1 %v3787_v8, %s4105_s25 }
 0x805   : > { %3151 = vrot.lane.b32.xlu1 %v3789_v17, %s4105_s25 }
 0x862   : > { %v3134_v21 = vpop.permute.xlu0 %3133 }
 0x866   : > { %v3138_v41 = vpop.permute.xlu0 %3137 }
 0x867   : > { %v3159_v51 = vsel %vm1637_vm8, %v3134_v21, %v3138_v41  ;;  %v5849_v5 = vpop.permute.xlu1 %3135 }
 0x868   : > { %v3164_v22 = vadd.f32 %v3159_v51, %v5120_v42 }
 0x86a   : > { %3169 = vst [vmem:[%s5853_s18 + $0x8] sm:$0xff] %v3164_v22  ;;  %v3142_v23 = vpop.permute.xlu0 %3141 }
 0x86b   : > { %v3157_v37 = vsel %vm1637_vm8, %v3138_v41, %v3142_v23  ;;  %v3140_v27 = vpop.permute.xlu1 %3139 }
 0x86c   : > { %v3165_v3 = vadd.f32 %v3157_v37, %v5305_v20  ;;  %v3160_v52 = vsel %vm1637_vm8, %v5849_v5, %v3140_v27 }
 0x86d   : > { %v3174_v42 = vsub.f32 %v5155_v63, %v3160_v52 }
 0x86e   : > { %3170 = vst [vmem:[%s5853_s18 + $0x10] sm:$0xff] %v3165_v3  ;;  %v3146_v49 = vpop.permute.xlu0 %3145 }
 0x86f   : > { %3179 = vst [vmem:[%s5865_s14 + $0x8] sm:$0xff] %v3174_v42  ;;  %v3155_v10 = vsel %vm1637_vm8, %v3142_v23, %v3146_v49  ;;  %v3144_v35 = vpop.permute.xlu1 %3143 }
 0x870   : > { %v3166_v20 = vadd.f32 %v3155_v10, %v5501_v11  ;;  %v3158_v24 = vsel %vm1637_vm8, %v3140_v27, %v3144_v35 }
 0x871   : > { %v3175_v63 = vsub.f32 %v5054_v47, %v3158_v24 }
 0x872   : > { %3171 = vst [vmem:[%s5853_s18 + $0x18] sm:$0xff] %v3166_v20  ;;  %v3150_v14 = vpop.permute.xlu0 %3149 }
 0x873   : > { %3180 = vst [vmem:[%s5865_s14 + $0x10] sm:$0xff] %v3175_v63  ;;  %v3153_v34 = vsel %vm1637_vm8, %v3146_v49, %v3150_v14  ;;  %v3161_v11 = vsel %vm1637_vm8, %v3150_v14, %v3134_v21  ;;  %v3148_v31 = vpop.permute.xlu1 %3147 }
 0x874   : > { %v3163_v19 = vadd.f32 %v3161_v11, %v5333_v32  ;;  %v3167_v16 = vadd.f32 %v3153_v34, %v5488_v45  ;;  %v3156_v47 = vsel %vm1637_vm8, %v3144_v35, %v3148_v31 }
 0x875   : > { %v3176_v2 = vsub.f32 %v5409_v44, %v3156_v47 }
 0x876   : > { %3168 = vst [vmem:[%s5853_s18] sm:$0xff] %v3163_v19  ;;  %3172 = vst [vmem:[%s5853_s18 + $0x20] sm:$0xff] %v3167_v16 }
 0x877   : > { %3181 = vst [vmem:[%s5865_s14 + $0x18] sm:$0xff] %v3176_v2  ;;  %v3152_v32 = vpop.permute.xlu1 %3151 }
 0x878   : > { %3995 = shalt.err (!%p3992_p6)
}
 0x879   : > { %s3996_s5 = scalar_lea.hbm %s5891_s0, 640  ;;  %s4000_s15 = scalar_lea.hbm %s5981_s7, 1280 }
 0x87a   : > { %p3997_p2 = scmp.ne.s32.totalorder %s5891_s0, %s3996_s5  ;;  %p4001_p12 = scmp.lt.s32.totalorder %s5891_s0, %s5981_s7 }
 0x87b   : > { %p4002_p0 = scmp.lt.s32.totalorder %s4000_s15, %s3996_s5 }
 0x87c   : > { %p3998_p13 = pnand %p3997_p2, %p6072_p5 }
 0x87d   : > { %p4003_p4 = por %p4002_p0, %p4001_p12 }
 0x87e   : > { %p3999_p11 = pneg %p3998_p13 }
 0x880   : > { %p4004_p9 = pnand %p4003_p4, %p3999_p11 }
 0x882   : > { %4007 = shalt.err (!%p4004_p9)
}
 0x883   : > { %3636 = dma.vmem_to_hbm [thread:$0]  (%p6072_p5), %s5893_s10, 640, %s5891_s0, %s3184_s13   ;;  %v3154_v44 = vsel %vm1637_vm8, %v3148_v31, %v3152_v32  ;;  %v3162_v45 = vsel %vm1637_vm8, %v3152_v32, %v5849_v5 }
 0x884   : > { %v3173_v48 = vsub.f32 %v5263_v38, %v3162_v45  ;;  %v3177_v55 = vsub.f32 %v5413_v46, %v3154_v44  ;;  %s5933_s24 = scalar_lea.hbm %s5982_s8, %s3610_s23  ;;  %s3189_s10 = scalar_lea.sflag [#allocation16], %s4353_s22 }
 0x885   : > { %s4008_s0 = scalar_lea.vmem %s3218_s3, 640  ;;  %s4109_s13 = smov [#allocation15]  }
 0x886   : > { %3178 = vst [vmem:[%s5865_s14] sm:$0xff] %v3173_v48  ;;  %3182 = vst [vmem:[%s5865_s14 + $0x20] sm:$0xff] %v3177_v55  ;;  %p4009_p10 = scmp.ne.s32.totalorder %s3218_s3, %s4008_s0  ;;  %s4012_s12 = sshll.u32 %s4109_s13, 4  ;;  %s4013_s12 = int_to_ptr.vmem [resolvable:$false] %s4012_s12 }
 0x887   : > { %s4014_s17 = scalar_lea.vmem %s4013_s12, 1280  ;;  %p4015_p3 = scmp.lt.s32.totalorder %s3218_s3, %s4013_s12 }
 0x888   : > { %p4010_p1 = pnand %p4009_p10, %p6072_p5  ;;  %p4016_p8 = scmp.lt.s32.totalorder %s4014_s17, %s4008_s0 }
 0x88a   : > { %p4011_p7 = pneg %p4010_p1  ;;  %p4017_p6 = por %p4016_p8, %p4015_p3 }
 0x88c   : > { %p4018_p2 = pnand %p4017_p6, %p4011_p7 }
 0x88e   : > { %4021 = shalt.err (!%p4018_p2)
}
 0x88f   : > { %s4022_s11 = scalar_lea.hbm %s5933_s24, 640  ;;  %s4026_s23 = scalar_lea.hbm %s5982_s8, 1280 }
 0x890   : > { %p4023_p13 = scmp.ne.s32.totalorder %s5933_s24, %s4022_s11  ;;  %p4027_p0 = scmp.lt.s32.totalorder %s5933_s24, %s5982_s8 }
 0x891   : > { %p4028_p4 = scmp.lt.s32.totalorder %s4026_s23, %s4022_s11 }
 0x892   : > { %p4024_p11 = pnand %p4023_p13, %p6072_p5 }
 0x893   : > { %p4029_p9 = por %p4028_p4, %p4027_p0 }
 0x894   : > { %p4025_p12 = pneg %p4024_p11 }
 0x896   : > { %p4030_p10 = pnand %p4029_p9, %p4025_p12 }
 0x898   : > { %4033 = shalt.err (!%p4030_p10)
}
 0x899   : > { %3637 = dma.vmem_to_hbm [thread:$0]  (%p6072_p5), %s3218_s3, 640, %s5933_s24, %s3189_s10  }
 0x89a PF: > { %s3229_s26 = sand.u32 1, %s4076_s27   ;;  %p6073_p1 = scmp.ne.s32.totalorder %s6019_s21, 0 }
 0x89b   : > { %p6074_p7 = scmp.ge.s32.totalorder %s4088_s30, 2  ;;  %s3230_s25 = scalar_lea.sflag [#allocation4], %s3229_s26 }
 0x89d   : > { %p3664_p3 = pnand %p6074_p7, %p6073_p1 }
 0x89f   : > { %p3665_p8 = pneg %p3664_p3 }
 0x8a1   : > { %4067 = dma.done.wait (%p3665_p8), %s3230_s25, 640  }
 0x8a2   : > { %4069 = vsyncadd (%p3665_p8), %s3230_s25, 4294966656  ;;  %s3239_s15 = scalar_lea.sflag [#allocation16], %s3229_s26 }
 0x8a3   : > { %4071 = dma.done.wait (%p3665_p8), %s3239_s15, 640  }
 0x8a4   : > { %4073 = vsyncadd (%p3665_p8), %s3239_s15, 4294966656  ;;  %s6075_s30 = sld [smem:[#allocation24_spill]]  ;;  %s6078_s27 = smov %s4080_s28 }
 0x8a5   : > { %s6076_s20 = sld [smem:[#allocation23_spill]] }
 0x8a6   : > { %s6077_s29 = sld [smem:[#allocation25_spill]] }
 0x8aa   : > { %p28_p5 = scmp.ge.s32.totalorder %s6075_s30, 4  }
 0x8ab   : > { %s6079_s28 = smov %s6076_s20 }
 0x8ac   :  { %30 = sbr.rel (!%p28_p5) target bundleno = 14 (0xe), region = 146 }
 0x8b1   :  { %3244 = vsyncpa [#allocation3], 1 }
 0x8b2   :  { %3246 = vsyncpa [#allocation3 + $0x1], 1 }
 0x8b3   :  { %3247 = vsyncpa [#allocation6], 1 }
 0x8b4   :  { %3249 = vsyncpa [#allocation6 + $0x1], 1 }
 0x8b5   :  { %3250 = vsyncpa [#allocation9], 1 }
 0x8b6   :  { %3251 = vsyncpa [#allocation12], 1 }
 0x8b7   :  { %3252 = vsyncpa [#allocation4], 1 }
 0x8b8   :  { %3254 = vsyncpa [#allocation4 + $0x1], 1 }
 0x8b9   :  { %3255 = vsyncpa [#allocation16], 1 }
 0x8ba   :  { %3257 = vsyncpa [#allocation16 + $0x1], 1 }

</bundles_post_ra>
